<compile_context>
chip_gen: v6e
topology: v6e:2x2x1
jax: 0.10.0
libtpu: 0.0.40
codegen_flags: <defaults>
</compile_context>

<pallas_src>
import functools

import jax
import jax.numpy as jnp
import numpy as np
from jax.experimental import pallas as pl
from jax.experimental.pallas import tpu as pltpu

# ---------------- problem constants (from the module) ----------------
C_IN = 3
C_OUT = 25
K = 5
STRIDE = 2
PADDING = 2

LANE = 128
ROWS = 2 * C_OUT          # even-phase rows stacked on odd-phase rows
ROWS_PAD = 56             # padded to a multiple of 8 sublanes (unmasked stores)


def _convt_relu_kernel(w_ref, b_ref, x_ref, o_ref, *, l_in, per_seg):
    """One lane-batched tile.

    w_ref : (3, ROWS_PAD, C_IN)  tap-grouped weights: [0]->x[m+1], [1]->x[m], [2]->x[m-1]
    b_ref : (ROWS_PAD, 1)        bias (duplicated for both phases, zero-padded rows)
    x_ref : (C_IN, LBLK)         raw x, `per_seg` batch elements per 128-lane segment
    o_ref : (ROWS_PAD, LBLK)     relu(conv^T); rows [0:C_OUT] even outputs, [C_OUT:2C_OUT] odd
    """
    x = x_ref[...]                                   # (C_IN, LBLK) f32
    lblk = x.shape[-1]

    # Shifted views via lane rotation (XLU) -- no im2col materialized in HBM.
    xp1 = pltpu.roll(x, lblk - 1, axis=1)            # out[m] = x[m+1]  (left roll)
    xm1 = pltpu.roll(x, 1, axis=1)                   # out[m] = x[m-1]  (right roll)

    # Zero the sub-batch boundary lanes that the circular roll contaminates.
    # Segment layout repeats every 128 lanes; boundary offsets are static.
    lanes = jax.lax.broadcasted_iota(jnp.int32, (C_IN, lblk), 1)
    p = jnp.bitwise_and(lanes, LANE - 1)             # lane position within segment
    mask_p1 = functools.reduce(
        jnp.logical_or, [p == q * l_in - 1 for q in range(1, per_seg + 1)])
    mask_m1 = functools.reduce(
        jnp.logical_or, [p == q * l_in for q in range(per_seg)])
    xp1 = jnp.where(mask_p1, 0.0, xp1)
    xm1 = jnp.where(mask_m1, 0.0, xm1)

    hi = jax.lax.Precision.HIGHEST
    acc = jnp.dot(w_ref[0], xp1, preferred_element_type=jnp.float32, precision=hi)
    acc = acc + jnp.dot(w_ref[1], x, preferred_element_type=jnp.float32, precision=hi)
    acc = acc + jnp.dot(w_ref[2], xm1, preferred_element_type=jnp.float32, precision=hi)
    acc = acc + b_ref[...]                           # (ROWS_PAD,1) broadcast, VPU (free)
    o_ref[...] = jnp.maximum(acc, 0.0).astype(o_ref.dtype)


def conv_transpose1d_relu(x, w, b, *, seg_per_step=128):
    """relu(conv_transpose1d(x, w, b, stride=2, padding=2)).

    x: (N, C_IN, L_in) f32
    w: (C_IN, C_OUT, K) f32   (PyTorch ConvTranspose1d weight layout)
    b: (C_OUT,) f32
    returns: (N, C_OUT, L_out) with L_out = (L_in-1)*2 - 2*2 + 5 = 2*L_in - 1
    """
    n, c_in, l_in = x.shape
    assert c_in == C_IN and w.shape == (C_IN, C_OUT, K) and b.shape == (C_OUT,)
    # TODO(synk): kernel packs whole batch elements into 128-lane segments, so it
    #             requires l_in <= 128; longer sequences need a multi-segment path.
    assert l_in <= LANE, "this kernel handles short sequences (l_in <= 128)"

    l_out = (l_in - 1) * STRIDE - 2 * PADDING + K          # = 2*l_in - 1

    xf = x.astype(jnp.float32)
    wf = w.astype(jnp.float32)
    bf = b.astype(jnp.float32)

    # ---- pack weights by tap {x[m+1], x[m], x[m-1]} x phase {even, odd} ----
    # even output j=2m : x[m+1]*w[:,:,0] + x[m]*w[:,:,2] + x[m-1]*w[:,:,4] + b
    # odd  output j=2m+1: x[m+1]*w[:,:,1] + x[m]*w[:,:,3]                  + b
    wt = jnp.transpose(wf, (1, 0, 2))                      # (C_OUT, C_IN, K)
    zeros = jnp.zeros((C_OUT, C_IN), jnp.float32)
    wa = jnp.concatenate([wt[:, :, 0], wt[:, :, 1]], axis=0)   # coeff of x[m+1]
    wb = jnp.concatenate([wt[:, :, 2], wt[:, :, 3]], axis=0)   # coeff of x[m]
    wc = jnp.concatenate([wt[:, :, 4], zeros], axis=0)         # coeff of x[m-1]
    w_stack = jnp.stack([wa, wb, wc], axis=0)                  # (3, 2*C_OUT, C_IN)
    w_stack = jnp.pad(w_stack, ((0, 0), (0, ROWS_PAD - ROWS), (0, 0)))
    b2 = jnp.pad(jnp.concatenate([bf, bf]), (0, ROWS_PAD - ROWS))[:, None]  # (56,1)

    # ---- pack x: `per_seg` batch elements per 128-lane segment, lane-dense ----
    per_seg = max(1, LANE // l_in)
    n_seg = -(-n // per_seg)                                   # segments needed
    nb_seg = min(n_seg, seg_per_step)                          # segments per grid step
    n_seg_pad = -(-n_seg // nb_seg) * nb_seg
    num_steps = n_seg_pad // nb_seg

    x_pad = jnp.pad(xf, ((0, n_seg_pad * per_seg - n), (0, 0), (0, 0)))
    x_seg = x_pad.reshape(n_seg_pad, per_seg, C_IN, l_in)
    x_seg = jnp.transpose(x_seg, (2, 0, 1, 3)).reshape(C_IN, n_seg_pad, per_seg * l_in)
    x_seg = jnp.pad(x_seg, ((0, 0), (0, 0), (0, LANE - per_seg * l_in)))
    x_packed = x_seg.reshape(C_IN, n_seg_pad * LANE)

    kernel = functools.partial(_convt_relu_kernel, l_in=l_in, per_seg=per_seg)
    y = pl.pallas_call(
        kernel,
        out_shape=jax.ShapeDtypeStruct((ROWS_PAD, n_seg_pad * LANE), jnp.float32),
        grid=(num_steps,),
        in_specs=[
            pl.BlockSpec((3, ROWS_PAD, C_IN), lambda i: (0, 0, 0)),   # weights (tiny)
            pl.BlockSpec((ROWS_PAD, 1), lambda i: (0, 0)),            # bias (tiny)
            pl.BlockSpec((C_IN, nb_seg * LANE), lambda i: (0, i)),    # raw x tile
        ],
        out_specs=pl.BlockSpec((ROWS_PAD, nb_seg * LANE), lambda i: (0, i)),
        compiler_params=pltpu.CompilerParams(
            dimension_semantics=(("parallel",) if num_steps > 1 else ("arbitrary",))),
    )(w_stack, b2, x_packed)

    # ---- unpack phases / segments back to (N, C_OUT, L_out) (cheap XLA glue) ----
    y = y[:ROWS].reshape(2, C_OUT, n_seg_pad, LANE)[:, :, :, :per_seg * l_in]
    y = y.reshape(2, C_OUT, n_seg_pad * per_seg, l_in)[:, :, :n, :]   # (2,C_OUT,N,L_in)
    inter = jnp.stack([y[0], y[1]], axis=-1).reshape(C_OUT, n, 2 * l_in)
    out = inter[:, :, :l_out]                                         # drop invalid tail
    return jnp.transpose(out, (1, 0, 2))                              # (N, C_OUT, L_out)


def _reference_numpy(x, w, b):
    """Direct definition of ConvTranspose1d + ReLU for validation."""
    x = np.asarray(x); w = np.asarray(w); b = np.asarray(b)
    n, c_in, l_in = x.shape
    l_out = (l_in - 1) * STRIDE - 2 * PADDING + K
    y = np.zeros((n, C_OUT, l_out), dtype=np.float32)
    for bi in range(n):
        for ci in range(c_in):
            for i in range(l_in):
                for k in range(K):
                    j = i * STRIDE - PADDING + k
                    if 0 <= j < l_out:
                        y[bi, :, j] += x[bi, ci, i] * w[ci, :, k]
    y += b[None, :, None]
    return np.maximum(y, 0.0)


if __name__ == "__main__":
    key = jax.random.PRNGKey(0)
    kx, kw, kb = jax.random.split(key, 3)

    # module's example input is (1, 3, 51); batch=4 exercises 2-per-segment packing.
    N, L_IN = 4, 51
    x = jax.random.normal(kx, (N, C_IN, L_IN), dtype=jnp.float32)

    # deterministic params (PyTorch ConvTranspose1d weight layout: (C_in, C_out, K))
    fan = C_IN * K
    bound = 1.0 / np.sqrt(fan)
    w = jax.random.uniform(kw, (C_IN, C_OUT, K), jnp.float32, -bound, bound)
    b = jax.random.uniform(kb, (C_OUT,), jnp.float32, -bound, bound)

    y = conv_transpose1d_relu(x, w, b)
    y = jax.block_until_ready(y)

    y_ref = _reference_numpy(x, w, b)
    np.testing.assert_allclose(np.asarray(y), y_ref, rtol=1e-4, atol=1e-4)

    print("KERNEL_OK")
</pallas_src>

<mosaic_0001>
module attributes {stable_mosaic.version = 11 : i64} {
  func.func @_convt_relu_kernel(%arg0: i32, %arg1: memref<3x56x3xf32, #tpu.memory_space<vmem>>, %arg2: memref<56x1xf32, #tpu.memory_space<vmem>>, %arg3: memref<3x256xf32, #tpu.memory_space<vmem>>, %arg4: memref<56x256xf32, #tpu.memory_space<vmem>>) attributes {dimension_semantics = [#tpu.dimension_semantics<arbitrary>], iteration_bounds = array<i64: 1>, scalar_prefetch = 0 : i64, scratch_operands = 0 : i64, tpu.core_type = #tpu.core_type<tc>, window_params = [{pipeline_mode = #tpu.pipeline_mode<synchronous>, transform_indices = @transform_0, window_bounds = array<i64: 3, 56, 3>}, {pipeline_mode = #tpu.pipeline_mode<synchronous>, transform_indices = @transform_1, window_bounds = array<i64: 56, 1>}, {transform_indices = @transform_2, window_bounds = array<i64: 3, 256>}, {transform_indices = @transform_3, window_bounds = array<i64: 56, 256>}]} {
    %c0 = arith.constant 0 : index
    %c0_0 = arith.constant 0 : index
    %0 = vector.load %arg3[%c0, %c0_0] : memref<3x256xf32, #tpu.memory_space<vmem>>, vector<3x256xf32>
    %c255_i32 = arith.constant 255 : i32
    %1 = tpu.dynamic_rotate %0 by %c255_i32 dim 1 : vector<3x256xf32>, i32 -> vector<3x256xf32>
    %c1_i32 = arith.constant 1 : i32
    %2 = tpu.dynamic_rotate %0 by %c1_i32 dim 1 : vector<3x256xf32>, i32 -> vector<3x256xf32>
    %3 = tpu.iota {dimensions = array<i32: 1>} : vector<3x256xi32>
    %c127_i32 = arith.constant 127 : i32
    %4 = vector.broadcast %c127_i32 : i32 to vector<3x256xi32>
    %5 = arith.andi %3, %4 : vector<3x256xi32>
    %c50_i32 = arith.constant 50 : i32
    %6 = vector.broadcast %c50_i32 : i32 to vector<3x256xi32>
    %7 = arith.cmpi eq, %5, %6 : vector<3x256xi32>
    %c101_i32 = arith.constant 101 : i32
    %8 = vector.broadcast %c101_i32 : i32 to vector<3x256xi32>
    %9 = arith.cmpi eq, %5, %8 : vector<3x256xi32>
    %10 = arith.ori %7, %9 : vector<3x256xi1>
    %c0_i32 = arith.constant 0 : i32
    %11 = vector.broadcast %c0_i32 : i32 to vector<3x256xi32>
    %12 = arith.cmpi eq, %5, %11 : vector<3x256xi32>
    %c51_i32 = arith.constant 51 : i32
    %13 = vector.broadcast %c51_i32 : i32 to vector<3x256xi32>
    %14 = arith.cmpi eq, %5, %13 : vector<3x256xi32>
    %15 = arith.ori %12, %14 : vector<3x256xi1>
    %cst = arith.constant 0.000000e+00 : f32
    %16 = vector.broadcast %cst : f32 to vector<3x256xf32>
    %17 = arith.select %10, %16, %1 : vector<3x256xi1>, vector<3x256xf32>
    %cst_1 = arith.constant 0.000000e+00 : f32
    %18 = vector.broadcast %cst_1 : f32 to vector<3x256xf32>
    %19 = arith.select %15, %18, %2 : vector<3x256xi1>, vector<3x256xf32>
    %c0_2 = arith.constant 0 : index
    %c0_3 = arith.constant 0 : index
    %c0_4 = arith.constant 0 : index
    %20 = vector.load %arg1[%c0_2, %c0_3, %c0_4] : memref<3x56x3xf32, #tpu.memory_space<vmem>>, vector<1x56x3xf32>
    %21 = vector.shape_cast %20 : vector<1x56x3xf32> to vector<56x3xf32>
    %cst_5 = arith.constant dense<0.000000e+00> : vector<56x256xf32>
    %22 = tpu.matmul %21, %17, %cst_5 {dimension_numbers = #tpu.dot_dimension_numbers<[1], [0], [0], [1], [0, 0, 1, 1], [], []>, precision = #tpu.contract_precision<fp32>} : vector<56x3xf32>, vector<3x256xf32>, vector<56x256xf32> -> vector<56x256xf32>
    %c1 = arith.constant 1 : index
    %c0_6 = arith.constant 0 : index
    %c0_7 = arith.constant 0 : index
    %23 = vector.load %arg1[%c1, %c0_6, %c0_7] : memref<3x56x3xf32, #tpu.memory_space<vmem>>, vector<1x56x3xf32>
    %24 = vector.shape_cast %23 : vector<1x56x3xf32> to vector<56x3xf32>
    %cst_8 = arith.constant dense<0.000000e+00> : vector<56x256xf32>
    %25 = tpu.matmul %24, %0, %cst_8 {dimension_numbers = #tpu.dot_dimension_numbers<[1], [0], [0], [1], [0, 0, 1, 1], [], []>, precision = #tpu.contract_precision<fp32>} : vector<56x3xf32>, vector<3x256xf32>, vector<56x256xf32> -> vector<56x256xf32>
    %26 = arith.addf %22, %25 : vector<56x256xf32>
    %c2 = arith.constant 2 : index
    %c0_9 = arith.constant 0 : index
    %c0_10 = arith.constant 0 : index
    %27 = vector.load %arg1[%c2, %c0_9, %c0_10] : memref<3x56x3xf32, #tpu.memory_space<vmem>>, vector<1x56x3xf32>
    %28 = vector.shape_cast %27 : vector<1x56x3xf32> to vector<56x3xf32>
    %cst_11 = arith.constant dense<0.000000e+00> : vector<56x256xf32>
    %29 = tpu.matmul %28, %19, %cst_11 {dimension_numbers = #tpu.dot_dimension_numbers<[1], [0], [0], [1], [0, 0, 1, 1], [], []>, precision = #tpu.contract_precision<fp32>} : vector<56x3xf32>, vector<3x256xf32>, vector<56x256xf32> -> vector<56x256xf32>
    %30 = arith.addf %26, %29 : vector<56x256xf32>
    %c0_12 = arith.constant 0 : index
    %c0_13 = arith.constant 0 : index
    %31 = vector.load %arg2[%c0_12, %c0_13] : memref<56x1xf32, #tpu.memory_space<vmem>>, vector<56x1xf32>
    %32 = vector.broadcast %31 : vector<56x1xf32> to vector<56x256xf32>
    %33 = arith.addf %30, %32 : vector<56x256xf32>
    %cst_14 = arith.constant 0.000000e+00 : f32
    %34 = vector.broadcast %cst_14 : f32 to vector<56x256xf32>
    %35 = arith.maximumf %33, %34 : vector<56x256xf32>
    %c0_15 = arith.constant 0 : index
    %c0_16 = arith.constant 0 : index
    %36 = vector.load %arg4[%c0_15, %c0_16] : memref<56x256xf32, #tpu.memory_space<vmem>>, vector<56x256xf32>
    tpu.vector_store %arg4[%c0_15, %c0_16], %35 {strides = array<i32>} : memref<56x256xf32, #tpu.memory_space<vmem>>, vector<56x256xf32>,
    return
  }
  func.func @transform_0(%arg0: i32) -> (i32, i32, i32) {
    %c0_i32 = arith.constant 0 : i32
    %c0_i32_0 = arith.constant 0 : i32
    %c0_i32_1 = arith.constant 0 : i32
    %c0_i32_2 = arith.constant 0 : i32
    return %c0_i32, %c0_i32_0, %c0_i32_1 : i32, i32, i32
  }
  func.func @transform_1(%arg0: i32) -> (i32, i32) {
    %c0_i32 = arith.constant 0 : i32
    %c0_i32_0 = arith.constant 0 : i32
    %c0_i32_1 = arith.constant 0 : i32
    return %c0_i32, %c0_i32_0 : i32, i32
  }
  func.func @transform_2(%arg0: i32) -> (i32, i32) {
    %c0_i32 = arith.constant 0 : i32
    %c0_i32_0 = arith.constant 0 : i32
    return %c0_i32, %arg0 : i32, i32
  }
  func.func @transform_3(%arg0: i32) -> (i32, i32) {
    %c0_i32 = arith.constant 0 : i32
    %c0_i32_0 = arith.constant 0 : i32
    return %c0_i32, %arg0 : i32, i32
  }
}

</mosaic_0001>

<bundles_post_ra>
// kernel: tpu_custom_call.1
= control target key start
LH: loop header
LB: loop body
LE: loop exit
PB: predicated region body
PF: predicated region fallthrough
CT: control target
= control target key end

     0   :  { %vm91_vm0 = vcmask 1042432   ;;  %s2595_s16 = smov 127   ;;  %v2596_v4 = vmov 0.0   ;;  %vm69_vm1 = vcmask 23552   ;;  %s2597_s24 = smov 1   ;;  %s3497_s0 = inlined_call_operand.vmem [shape: f32[3,56,3], index: 0, kind: input, shape index: {}]   ;;  %s3498_s1 = inlined_call_operand.vmem [shape: f32[56,1], index: 1, kind: input, shape index: {}]   ;;  %s3499_s2 = inlined_call_operand.vmem [shape: f32[3,256], index: 2, kind: input, shape index: {}]   ;;  %s3500_s3 = inlined_call_operand.hbm [shape: f32[56,256], index: 3, kind: output, shape index: {}]  }
   0x1   :  { %v15_v0 = vld [vmem:[%s3499_s2] sm:$0x77]  ;;  %v2549_v1 = vld [vmem:[%s3497_s0 + $0x38] sm:$0xff]  ;;  %162 = vmatprep.mubr.f32.mxu0 %v2596_v4  ;;  %v2551_v6 = vld [vmem:[%s3497_s0 + $0x48] sm:$0xff]  ;;  %314 = vmatprep.mubr.f32.mxu1 %v2596_v4 }
   0x2   :  { %19 = vrot.lane.b32.xlu0 %v15_v0, %s2595_s16  ;;  %v92_v2 = vsel %vm91_vm0, %v15_v0, 0  ;;  %v17_v3 = vcombine.high %v15_v0, %v15_v0  ;;  %v2550_v5 = vld [vmem:[%s3497_s0 + $0x40] sm:$0xff]  ;;  %v2552_v7 = vld [vmem:[%s3497_s0 + $0x50] sm:$0xff]  ;;  %v71_v9 = vsel %vm69_vm1, %v2549_v1, 0  ;;  %v77_v11 = vsel %vm69_vm1, %v2551_v6, 0  ;;  %v2553_v12 = vld [vmem:[%s3497_s0 + $0x58] sm:$0xff] }
   0x3   :  { %v2639_v8 = vand.u32 4294901760, %v92_v2  ;;  %v74_v10 = vsel %vm69_vm1, %v2550_v5, 0  ;;  %28 = vrot.lane.b32.xlu1 %v15_v0, %s2597_s24  ;;  %v2649_v14 = vand.u32 4294901760, %v71_v9  ;;  %v2653_v16 = vand.u32 4294901760, %v77_v11 }
   0x4   :  { %v94_v13 = vsel %vm91_vm0, %v17_v3, 0  ;;  %v2651_v15 = vand.u32 4294901760, %v74_v10  ;;  %v80_v19 = vsel %vm69_vm1, %v2552_v7, 0  ;;  %v83_v20 = vsel %vm69_vm1, %v2553_v12, 0 }
   0x5   :  { %v126_v17 = vand.u32 4294901760, %v94_v13  ;;  %v2656_v18 = vsub.f32 %v92_v2, %v2639_v8  ;;  %v2661_v21 = vsub.f32 %v71_v9, %v2649_v14  ;;  %v2667_v23 = vsub.f32 %v77_v11, %v2653_v16 }
   0x6   :  { %21 = vrot.lane.b32.xlu0 %v17_v3, %s2595_s16  ;;  %v2664_v22 = vsub.f32 %v74_v10, %v2651_v15  ;;  %v2669_v24 = vand.u32 4294901760, %v80_v19 }
   0x7   :  { %8 = vsyncpa [#allocation3], 0  ;;  %127 = vmatprep.subr.mxu0 %v126_v17  ;;  %v271_v25 = vsub.f32 %v94_v13, %v126_v17  ;;  %v278_v26 = vand.u32 4294901760, %v2656_v18  ;;  %30 = vrot.lane.b32.xlu1 %v17_v3, %s2597_s24  ;;  %v165_v27 = vand.u32 4294901760, %v2661_v21  ;;  %v2554_v29 = vld [vmem:[%s3497_s0 + $0x60] sm:$0xff]  ;;  %v2681_v32 = vand.u32 4294901760, %v83_v20 }
   0x8   :  { %129 = vmatpush1.msra.mxu0 %v2639_v8  ;;  %v176_v28 = vand.u32 4294901760, %v2664_v22  ;;  %v187_v35 = vand.u32 4294901760, %v2667_v23  ;;  %v2691_v36 = vsub.f32 %v80_v19, %v2669_v24  ;;  %v86_v38 = vsel %vm69_vm1, %v2554_v29, 0  ;;  %v2555_v41 = vld [vmem:[%s3497_s0 + $0x68] sm:$0xff]  ;;  %v54_v1 = vld [vmem:[%s3497_s0] sm:$0xff]  ;;  %v56_v9 = vld [vmem:[%s3497_s0 + $0x10] sm:$0xff] }
   0x9   :  { %v272_v30 = vand.u32 4294901760, %v271_v25  ;;  %v279_v31 = vsub.f32 %v2656_v18, %v278_v26  ;;  %396 = vmatprep.subr.mxu0 %v271_v25  ;;  %v166_v33 = vsub.f32 %v2661_v21, %v165_v27  ;;  %v2698_v43 = vsub.f32 %v83_v20, %v2681_v32  ;;  %v55_v5 = vld [vmem:[%s3497_s0 + $0x8] sm:$0xff]  ;;  %v57_v13 = vld [vmem:[%s3497_s0 + $0x18] sm:$0xff]  ;;  %v58_v20 = vld [vmem:[%s3497_s0 + $0x20] sm:$0xff] }
   0xa   :  { %v177_v34 = vsub.f32 %v2664_v22, %v176_v28  ;;  %v188_v45 = vsub.f32 %v2667_v23, %v187_v35  ;;  %v198_v46 = vand.u32 4294901760, %v2691_v36  ;;  %v2704_v47 = vand.u32 4294901760, %v86_v38 }
   0xb   :  { %v273_v37 = vsub.f32 %v271_v25, %v272_v30  ;;  %v167_v39 = vand.u32 4294901760, %v166_v33  ;;  %v280_v40 = vand.u32 4294901760, %v279_v31  ;;  %v89_v48 = vsel %vm69_vm1, %v2555_v41, 0 }
   0xc   :  { %v178_v44 = vand.u32 4294901760, %v177_v34  ;;  %v209_v49 = vand.u32 4294901760, %v2698_v43  ;;  %v189_v50 = vand.u32 4294901760, %v188_v45  ;;  %v199_v51 = vsub.f32 %v2691_v36, %v198_v46 }
   0xd   :  { %v274_v42 = vand.u32 4294901760, %v273_v37  ;;  %168 = vmatmul.mubr.f32.vlgmr.msra.gmra.mxu0 %v167_v39  ;;  %v219_v52 = vsub.f32 %v86_v38, %v2704_v47  ;;  %v2716_v53 = vand.u32 4294901760, %v89_v48  ;;  %v23_v0 = vlaneseq }
   0xe   :  { %173 = vmatprep.mubr.f32.mxu0 %v2596_v4  ;;  %399 = vmatpush1.msra.mxu0 %v2656_v18  ;;  %v200_v54 = vand.u32 4294901760, %v199_v51  ;;  %v210_v55 = vsub.f32 %v2698_v43, %v209_v49  ;;  %v856_v3 = vsel %vm69_vm1, %v54_v1, 0 }
   0xf   :  { %275 = vmatprep.subr.mxu1 %v274_v42  ;;  %652 = vmatprep.subr.mxu0 %v272_v30  ;;  %v220_v56 = vand.u32 4294901760, %v219_v52  ;;  %v230_v57 = vsub.f32 %v89_v48, %v2716_v53  ;;  %v2804_v2 = vand.u32 127, %v23_v0  ;;  %v2810_v6 = vand.u32 4294901760, %v856_v3 }
  0x10   :  { %281 = vmatpush1.msra.mxu1 %v280_v40  ;;  %v211_v58 = vand.u32 4294901760, %v210_v55 }
  0x11   :  { %316 = vmatmul.mubr.f32.vlgmr.msra.gmra.mxu1 %v2649_v14  ;;  %520 = vmatprep.subr.mxu1 %v126_v17  ;;  %v221_v59 = vsub.f32 %v219_v52, %v220_v56  ;;  %v231_v60 = vand.u32 4294901760, %v230_v57  ;;  %v35_v7 = vadd.s32 128, %v2804_v2  ;;  %v2818_v10 = vsub.f32 %v856_v3, %v2810_v6 }
  0x12   :  { %179 = vmatmul.mubr.f32.gmra.mxu0 %v178_v44  ;;  %321 = vmatprep.mubr.f32.mxu1 %v2596_v4  ;;  %vm38_vm2 = vcmp.eq.s32.totalorder %v2804_v2, 50  ;;  %vm40_vm3 = vcmp.eq.s32.totalorder %v2804_v2, 101  ;;  %vm25_vm6 = vcmp.lt.s32.totalorder %v2804_v2, 127  ;;  %vm32_vm9 = vcmp.lt.s32.totalorder %v2804_v2, 1 }
  0x13   :  { %184 = vmatprep.mubr.f32.mxu0 %v2596_v4  ;;  %522 = vmatpush1.msra.mxu1 %v2639_v8  ;;  %v222_v61 = vand.u32 4294901760, %v221_v59  ;;  %v232_v62 = vsub.f32 %v230_v57, %v231_v60  ;;  %v2820_v11 = vand.u32 127, %v35_v7  ;;  %vm2843_vm7 = vmor %vm38_vm2, %vm40_vm3  ;;  %vm44_vm13 = vcmp.eq.s32.totalorder %v2804_v2, 0 }
  0x14   :  { %770 = vmatprep.subr.mxu1 %v126_v17  ;;  %vm46_vm14 = vcmp.eq.s32.totalorder %v2804_v2, 51 }
  0x15   :  { %323 = vmatmul.mubr.f32.gmra.mxu1 %v2651_v15  ;;  %v233_v63 = vand.u32 4294901760, %v232_v62  ;;  %vm39_vm4 = vcmp.eq.s32.totalorder %v2820_v11, 50  ;;  %vm41_vm5 = vcmp.eq.s32.totalorder %v2820_v11, 101  ;;  %vm45_vm10 = vcmp.eq.s32.totalorder %v2820_v11, 0  ;;  %vm48_vm15 = vmor %vm44_vm13, %vm46_vm14 }
  0x16   :  { %190 = vmatmul.mubr.f32.gmra.mxu0 %v189_v50  ;;  %328 = vmatprep.mubr.f32.mxu1 %v2596_v4  ;;  %vm43_vm8 = vmor %vm39_vm4, %vm41_vm5  ;;  %vm47_vm11 = vcmp.eq.s32.totalorder %v2820_v11, 51 }
  0x17   :  { %195 = vmatprep.mubr.f32.mxu0 %v2596_v4  ;;  %vm49_vm12 = vmor %vm45_vm10, %vm47_vm11 }
  0x19   :  { %330 = vmatmul.mubr.f32.gmra.mxu1 %v2653_v16 }
  0x1a   :  { %201 = vmatmul.mubr.f32.gmra.mxu0 %v200_v54  ;;  %335 = vmatprep.mubr.f32.mxu1 %v2596_v4 }
  0x1b   :  { %206 = vmatprep.mubr.f32.mxu0 %v2596_v4 }
  0x1d   :  { %337 = vmatmul.mubr.f32.gmra.mxu1 %v2669_v24 }
  0x1e   :  { %212 = vmatmul.mubr.f32.gmra.mxu0 %v211_v58  ;;  %342 = vmatprep.mubr.f32.mxu1 %v2596_v4 }
  0x1f   :  { %217 = vmatprep.mubr.f32.mxu0 %v2596_v4 }
  0x21   :  { %344 = vmatmul.mubr.f32.gmra.mxu1 %v2681_v32 }
  0x22   :  { %223 = vmatmul.mubr.f32.gmra.mxu0 %v222_v61  ;;  %349 = vmatprep.mubr.f32.mxu1 %v2596_v4 }
  0x23   :  { %228 = vmatprep.mubr.f32.mxu0 %v2596_v4 }
  0x25   :  { %351 = vmatmul.mubr.f32.gmra.mxu1 %v2704_v47 }
  0x26   :  { %234 = vmatmul.mubr.f32.gmra.mxu0 %v233_v63  ;;  %356 = vmatprep.mubr.f32.mxu1 %v2596_v4 }
  0x27   :  { %432 = vmatprep.mubr.f32.mxu0 %v2596_v4 }
  0x29   :  { %358 = vmatmul.mubr.f32.gmra.mxu1 %v2716_v53 }
  0x2a   :  { %435 = vmatmul.mubr.f32.vlgmr.msra.gmra.mxu0 %v2661_v21  ;;  %555 = vmatprep.mubr.f32.mxu1 %v2596_v4 }
  0x2b   :  { %440 = vmatprep.mubr.f32.mxu0 %v2596_v4  ;;  %656 = vmatpush1.msra.mxu0 %v278_v26 }
  0x2d   :  { %559 = vmatmul.mubr.f32.vlgmr.msra.gmra.mxu1 %v165_v27 }
  0x2e   :  { %443 = vmatmul.mubr.f32.gmra.mxu0 %v2664_v22  ;;  %564 = vmatprep.mubr.f32.mxu1 %v2596_v4 }
  0x2f   :  { %448 = vmatprep.mubr.f32.mxu0 %v2596_v4  ;;  %772 = vmatpush1.msra.mxu1 %v2639_v8  ;;  %v859_v8 = vsel %vm69_vm1, %v55_v5, 0 }
  0x30   :  { %v2822_v12 = vand.u32 4294901760, %v859_v8 }
  0x31   :  { %568 = vmatmul.mubr.f32.gmra.mxu1 %v176_v28  ;;  %v59_v28 = vld [vmem:[%s3497_s0 + $0x28] sm:$0xff] }
  0x32   :  { %451 = vmatmul.mubr.f32.gmra.mxu0 %v2667_v23  ;;  %573 = vmatprep.mubr.f32.mxu1 %v2596_v4  ;;  %v2835_v18 = vsub.f32 %v859_v8, %v2822_v12  ;;  %v871_v38 = vsel %vm69_vm1, %v59_v28, 0 }
  0x33   :  { %456 = vmatprep.mubr.f32.mxu0 %v2596_v4  ;;  %v2887_v48 = vand.u32 4294901760, %v871_v38 }
  0x34   :  { %v962_v26 = vand.u32 4294901760, %v2835_v18 }
  0x35   :  { %577 = vmatmul.mubr.f32.gmra.mxu1 %v187_v35  ;;  %v2908_v63 = vsub.f32 %v871_v38, %v2887_v48  ;;  %v2558_v38 = vld [vmem:[%s3497_s0 + $0x80] sm:$0xff] }
  0x36   :  { %459 = vmatmul.mubr.f32.gmra.mxu0 %v2691_v36  ;;  %582 = vmatprep.mubr.f32.mxu1 %v2596_v4  ;;  %v963_v41 = vsub.f32 %v2835_v18, %v962_v26 }
  0x37   :  { %464 = vmatprep.mubr.f32.mxu0 %v2596_v4  ;;  %v1006_v5 = vand.u32 4294901760, %v2908_v63 }
  0x39   :  { %586 = vmatmul.mubr.f32.gmra.mxu1 %v198_v46  ;;  %v1007_v11 = vsub.f32 %v2908_v63, %v1006_v5 }
  0x3a   :  { %467 = vmatmul.mubr.f32.gmra.mxu0 %v2698_v43  ;;  %591 = vmatprep.mubr.f32.mxu1 %v2596_v4  ;;  %v60_v43 = vld [vmem:[%s3497_s0 + $0x30] sm:$0xff] }
  0x3b   :  { %472 = vmatprep.mubr.f32.mxu0 %v2596_v4 }
  0x3d   :  { %595 = vmatmul.mubr.f32.gmra.mxu1 %v209_v49  ;;  %v874_v49 = vsel %vm69_vm1, %v60_v43, 0 }
  0x3e   :  { %475 = vmatmul.mubr.f32.gmra.mxu0 %v219_v52  ;;  %600 = vmatprep.mubr.f32.mxu1 %v2596_v4  ;;  %v964_v52 = vand.u32 4294901760, %v963_v41  ;;  %v2905_v59 = vand.u32 4294901760, %v874_v49  ;;  %v2559_v41 = vld [vmem:[%s3497_s0 + $0x88] sm:$0xff] }
  0x3f   :  { %480 = vmatprep.mubr.f32.mxu0 %v2596_v4 }
  0x40   :  { %v2920_v7 = vsub.f32 %v874_v49, %v2905_v59 }
  0x41   :  { %604 = vmatmul.mubr.f32.gmra.mxu1 %v220_v56 }
  0x42   :  { %483 = vmatmul.mubr.f32.gmra.mxu0 %v230_v57  ;;  %609 = vmatprep.mubr.f32.mxu1 %v2596_v4 }
  0x43   :  { %689 = vmatprep.mubr.f32.mxu0 %v2596_v4 }
  0x45   :  { %613 = vmatmul.mubr.f32.gmra.mxu1 %v231_v60 }
  0x46   :  { %691 = vmatmul.mubr.f32.vlgmr.msra.gmra.mxu0 %v2649_v14  ;;  %805 = vmatprep.mubr.f32.mxu1 %v2596_v4 }
  0x47   :  { %696 = vmatprep.mubr.f32.mxu0 %v2596_v4 }
  0x49   :  { %807 = vmatmul.mubr.f32.vlgmr.msra.gmra.mxu1 %v2649_v14  ;;  %v862_v14 = vsel %vm69_vm1, %v56_v9, 0 }
  0x4a   :  { %698 = vmatmul.mubr.f32.gmra.mxu0 %v2651_v15  ;;  %812 = vmatprep.mubr.f32.mxu1 %v2596_v4  ;;  %v2837_v19 = vand.u32 4294901760, %v862_v14 }
  0x4b   :  { %703 = vmatprep.mubr.f32.mxu0 %v2596_v4 }
  0x4c   :  { %v2855_v27 = vsub.f32 %v862_v14, %v2837_v19 }
  0x4d   :  { %814 = vmatmul.mubr.f32.gmra.mxu1 %v2651_v15  ;;  %v951_v15 = vand.u32 4294901760, %v2818_v10 }
  0x4e   :  { %705 = vmatmul.mubr.f32.gmra.mxu0 %v2653_v16  ;;  %819 = vmatprep.mubr.f32.mxu1 %v2596_v4  ;;  %v973_v42 = vand.u32 4294901760, %v2855_v27 }
  0x4f   :  { %710 = vmatprep.mubr.f32.mxu0 %v2596_v4  ;;  %v952_v23 = vsub.f32 %v2818_v10, %v951_v15 }
  0x51   :  { %821 = vmatmul.mubr.f32.gmra.mxu1 %v2653_v16  ;;  %v865_v16 = vsel %vm69_vm1, %v57_v13, 0  ;;  %v953_v37 = vand.u32 4294901760, %v952_v23  ;;  %v1017_v13 = vand.u32 4294901760, %v2920_v7 }
  0x52   :  { %712 = vmatmul.mubr.f32.gmra.mxu0 %v2669_v24  ;;  %826 = vmatprep.mubr.f32.mxu1 %v2596_v4  ;;  %v2847_v22 = vand.u32 4294901760, %v865_v16 }
  0x53   :  { %717 = vmatprep.mubr.f32.mxu0 %v2596_v4 }
  0x54   :  { %v2863_v33 = vsub.f32 %v865_v16, %v2847_v22 }
  0x55   :  { %828 = vmatmul.mubr.f32.gmra.mxu1 %v2669_v24  ;;  %v868_v24 = vsel %vm69_vm1, %v58_v20, 0  ;;  %v1018_v20 = vsub.f32 %v2920_v7, %v1017_v13 }
  0x56   :  { %719 = vmatmul.mubr.f32.gmra.mxu0 %v2681_v32  ;;  %833 = vmatprep.mubr.f32.mxu1 %v2596_v4  ;;  %v2865_v34 = vand.u32 4294901760, %v868_v24  ;;  %v984_v46 = vand.u32 4294901760, %v2863_v33 }
  0x57   :  { %724 = vmatprep.mubr.f32.mxu0 %v2596_v4  ;;  %v1019_v23 = vand.u32 4294901760, %v1018_v20 }
  0x58   :  { %v985_v57 = vsub.f32 %v2863_v33, %v984_v46 }
  0x59   :  { %835 = vmatmul.mubr.f32.gmra.mxu1 %v2681_v32 }
  0x5a   :  { %726 = vmatmul.mubr.f32.gmra.mxu0 %v2704_v47  ;;  %840 = vmatprep.mubr.f32.mxu1 %v2596_v4  ;;  %v986_v1 = vand.u32 4294901760, %v985_v57 }
  0x5b   :  { %731 = vmatprep.mubr.f32.mxu0 %v2596_v4 }
  0x5d   :  { %842 = vmatmul.mubr.f32.gmra.mxu1 %v2704_v47  ;;  %v2885_v47 = vsub.f32 %v868_v24, %v2865_v34 }
  0x5e   :  { %733 = vmatmul.mubr.f32.gmra.mxu0 %v2716_v53  ;;  %847 = vmatprep.mubr.f32.mxu1 %v2596_v4 }
  0x5f   :  { %948 = vmatprep.mubr.f32.mxu0 %v2596_v4  ;;  %v995_v58 = vand.u32 4294901760, %v2885_v47 }
  0x61   :  { %849 = vmatmul.mubr.f32.gmra.mxu1 %v2716_v53  ;;  %v974_v53 = vsub.f32 %v2855_v27, %v973_v42  ;;  %v996_v3 = vsub.f32 %v2885_v47, %v995_v58 }
  0x62   :  { %1100 = vmatprep.mubr.f32.mxu1 %v2596_v4 }
  0x63   :  { %v975_v62 = vand.u32 4294901760, %v974_v53  ;;  %v997_v9 = vand.u32 4294901760, %v996_v3 }
  0x74   :  { %v20_v17 = vpop.permute.xlu0 %19 }
  0x75   :  { %v2894_v54 = vpop.permute.xlu1 %28 }
  0x78   :  { %v22_v25 = vpop.permute.xlu0 %21 }
  0x79   :  { %v26_v29 = vsel %vm25_vm6, %v20_v17, %v22_v25  ;;  %v27_v30 = vsel %vm25_vm6, %v22_v25, %v20_v17  ;;  %v31_v0 = vpop.permute.xlu1 %30  ;;  %v1008_v17 = vand.u32 4294901760, %v1007_v11 }
  0x7a   :  { %v50_v31 = vsel %vm2843_vm7, 0.0, %v26_v29  ;;  %v51_v32 = vsel %vm43_vm8, 0.0, %v27_v30  ;;  %v33_v8 = vsel %vm32_vm9, %v2894_v54, %v31_v0  ;;  %v34_v30 = vsel %vm32_vm9, %v31_v0, %v2894_v54 }
  0x7b   :  { %v877_v35 = vsel %vm91_vm0, %v50_v31, 0  ;;  %v880_v36 = vsel %vm91_vm0, %v51_v32, 0  ;;  %v53_v14 = vsel %vm49_vm12, 0.0, %v33_v8  ;;  %v52_v31 = vsel %vm48_vm15, 0.0, %v34_v30 }
  0x7c   :  { %v912_v39 = vand.u32 4294901760, %v880_v36  ;;  %v2870_v40 = vand.u32 4294901760, %v877_v35  ;;  %v1674_v16 = vsel %vm91_vm0, %v53_v14, 0 }
  0x7d   :  { %v2942_v21 = vand.u32 4294901760, %v1674_v16 }
  0x7e   :  { %v2880_v44 = vsub.f32 %v877_v35, %v2870_v40  ;;  %913 = vmatprep.subr.mxu0 %v912_v39  ;;  %v1057_v45 = vsub.f32 %v880_v36, %v912_v39  ;;  %v2557_v35 = vld [vmem:[%s3497_s0 + $0x78] sm:$0xff] }
  0x7f   :  { %915 = vmatpush1.msra.mxu0 %v2870_v40  ;;  %v2948_v24 = vsub.f32 %v1674_v16, %v2942_v21 }
  0x80   :  { %v1064_v50 = vand.u32 4294901760, %v2880_v44  ;;  %954 = vmatmul.mubr.f32.vlgmr.msra.gmra.mxu0 %v953_v37  ;;  %1182 = vmatprep.subr.mxu0 %v1057_v45  ;;  %v1058_v51 = vand.u32 4294901760, %v1057_v45  ;;  %v1653_v37 = vsel %vm69_vm1, %v2557_v35, 0 }
  0x81   :  { %1185 = vmatpush1.msra.mxu0 %v2880_v44  ;;  %959 = vmatprep.mubr.f32.mxu0 %v2596_v4  ;;  %v1852_v25 = vand.u32 4294901760, %v2948_v24 }
  0x82   :  { %1438 = vmatprep.subr.mxu0 %v1058_v51  ;;  %v1059_v55 = vsub.f32 %v1057_v45, %v1058_v51  ;;  %v1065_v56 = vsub.f32 %v2880_v44, %v1064_v50  ;;  %v1659_v44 = vsel %vm69_vm1, %v2559_v41, 0  ;;  %v2560_v45 = vld [vmem:[%s3497_s0 + $0x90] sm:$0xff] }
  0x83   :  { %v1853_v28 = vsub.f32 %v2948_v24, %v1852_v25 }
  0x84   :  { %965 = vmatmul.mubr.f32.gmra.mxu0 %v964_v52  ;;  %v1060_v60 = vand.u32 4294901760, %v1059_v55  ;;  %v1066_v61 = vand.u32 4294901760, %v1065_v56 }
  0x85   :  { %970 = vmatprep.mubr.f32.mxu0 %v2596_v4  ;;  %v1854_v29 = vand.u32 4294901760, %v1853_v28 }
  0x86   :  { %1061 = vmatprep.subr.mxu1 %v1060_v60 }
  0x87   :  { %1067 = vmatpush1.msra.mxu1 %v1066_v61 }
  0x88   :  { %976 = vmatmul.mubr.f32.gmra.mxu0 %v975_v62  ;;  %1102 = vmatmul.mubr.f32.vlgmr.msra.gmra.mxu1 %v2810_v6 }
  0x89   :  { %1306 = vmatprep.subr.mxu1 %v912_v39  ;;  %981 = vmatprep.mubr.f32.mxu0 %v2596_v4 }
  0x8a   :  { %1308 = vmatpush1.msra.mxu1 %v2870_v40  ;;  %1107 = vmatprep.mubr.f32.mxu1 %v2596_v4 }
  0x8b   :  { %1556 = vmatprep.subr.mxu1 %v912_v39  ;;  %v3044_v39 = vand.u32 4294901760, %v1653_v37 }
  0x8c   :  { %987 = vmatmul.mubr.f32.gmra.mxu0 %v986_v1  ;;  %1109 = vmatmul.mubr.f32.gmra.mxu1 %v2822_v12 }
  0x8d   :  { %992 = vmatprep.mubr.f32.mxu0 %v2596_v4  ;;  %1114 = vmatprep.mubr.f32.mxu1 %v2596_v4 }
  0x90   :  { %998 = vmatmul.mubr.f32.gmra.mxu0 %v997_v9  ;;  %1116 = vmatmul.mubr.f32.gmra.mxu1 %v2837_v19 }
  0x91   :  { %1003 = vmatprep.mubr.f32.mxu0 %v2596_v4  ;;  %1121 = vmatprep.mubr.f32.mxu1 %v2596_v4 }
  0x94   :  { %1009 = vmatmul.mubr.f32.gmra.mxu0 %v1008_v17  ;;  %1123 = vmatmul.mubr.f32.gmra.mxu1 %v2847_v22 }
  0x95   :  { %1014 = vmatprep.mubr.f32.mxu0 %v2596_v4  ;;  %1128 = vmatprep.mubr.f32.mxu1 %v2596_v4 }
  0x98   :  { %1020 = vmatmul.mubr.f32.gmra.mxu0 %v1019_v23  ;;  %1130 = vmatmul.mubr.f32.gmra.mxu1 %v2865_v34 }
  0x99   :  { %1135 = vmatprep.mubr.f32.mxu1 %v2596_v4  ;;  %1218 = vmatprep.mubr.f32.mxu0 %v2596_v4 }
  0x9c   :  { %1137 = vmatmul.mubr.f32.gmra.mxu1 %v2887_v48  ;;  %1221 = vmatmul.mubr.f32.vlgmr.msra.gmra.mxu0 %v2818_v10  ;;  %v1671_v10 = vsel %vm91_vm0, %v52_v31, 0 }
  0x9d   :  { %1442 = vmatpush1.msra.mxu0 %v1064_v50  ;;  %1142 = vmatprep.mubr.f32.mxu1 %v2596_v4  ;;  %v2990_v2 = vand.u32 4294901760, %v1671_v10  ;;  %v1662_v50 = vsel %vm69_vm1, %v2560_v45, 0  ;;  %v2598_v45 = vmov 0  }
  0x9e   :  { %1226 = vmatprep.mubr.f32.mxu0 %v2596_v4  ;;  %1707 = vmatprep.subr.mxu0 %v2942_v21  ;;  %v3086_v53 = vand.u32 4294901760, %v1662_v50 }
  0x9f   :  { %2570 = vset.pattern.permute.xlu0 %v2598_v45  ;;  %2571 = vset.pattern.permute.xlu1 %v2598_v45 }
  0xa0   :  { %1144 = vmatmul.mubr.f32.gmra.mxu1 %v2905_v59  ;;  %1229 = vmatmul.mubr.f32.gmra.mxu0 %v2835_v18  ;;  %v3104_v1 = vsub.f32 %v1662_v50, %v3086_v53  ;;  %v2450_v50 = vld [vmem:[%s3498_s1 + $0x8] sm:$0xff] }
  0xa1   :  { %1234 = vmatprep.mubr.f32.mxu0 %v2596_v4  ;;  %1341 = vmatprep.mubr.f32.mxu1 %v2596_v4 }
  0xa2   :  { %v1789_v20 = vand.u32 4294901760, %v3104_v1  ;;  %2463 = vperm.xlu1 %2571, %v2450_v50  }
  0xa4   :  { %1237 = vmatmul.mubr.f32.gmra.mxu0 %v2855_v27  ;;  %1345 = vmatmul.mubr.f32.vlgmr.msra.gmra.mxu1 %v951_v15  ;;  %v2998_v15 = vsub.f32 %v1671_v10, %v2990_v2  ;;  %v2556_v27 = vld [vmem:[%s3497_s0 + $0x70] sm:$0xff] }
  0xa5   :  { %1558 = vmatpush1.msra.mxu1 %v2870_v40  ;;  %1242 = vmatprep.mubr.f32.mxu0 %v2596_v4  ;;  %v1650_v32 = vsel %vm69_vm1, %v2556_v27, 0  ;;  %v1656_v40 = vsel %vm69_vm1, %v2558_v38, 0 }
  0xa6   :  { %1350 = vmatprep.mubr.f32.mxu1 %v2596_v4  ;;  %1855 = vmatprep.subr.mxu1 %v1854_v29  ;;  %v1858_v18 = vand.u32 4294901760, %v2998_v15  ;;  %v3030_v36 = vand.u32 4294901760, %v1650_v32  ;;  %v3058_v43 = vand.u32 4294901760, %v1656_v40 }
  0xa8   :  { %1245 = vmatmul.mubr.f32.gmra.mxu0 %v2863_v33  ;;  %1354 = vmatmul.mubr.f32.gmra.mxu1 %v962_v26  ;;  %v1859_v26 = vsub.f32 %v2998_v15, %v1858_v18  ;;  %v3075_v49 = vsub.f32 %v1656_v40, %v3058_v43 }
  0xa9   :  { %1250 = vmatprep.mubr.f32.mxu0 %v2596_v4  ;;  %1359 = vmatprep.mubr.f32.mxu1 %v2596_v4 }
  0xaa   :  { %v1860_v33 = vand.u32 4294901760, %v1859_v26  ;;  %v1767_v57 = vand.u32 4294901760, %v3075_v49 }
  0xac   :  { %1253 = vmatmul.mubr.f32.gmra.mxu0 %v2885_v47  ;;  %1363 = vmatmul.mubr.f32.gmra.mxu1 %v973_v42  ;;  %v3056_v42 = vsub.f32 %v1653_v37, %v3044_v39 }
  0xad   :  { %1258 = vmatprep.mubr.f32.mxu0 %v2596_v4  ;;  %1368 = vmatprep.mubr.f32.mxu1 %v2596_v4 }
  0xae   :  { %v1756_v47 = vand.u32 4294901760, %v3056_v42 }
  0xb0   :  { %1261 = vmatmul.mubr.f32.gmra.mxu0 %v2908_v63  ;;  %1372 = vmatmul.mubr.f32.gmra.mxu1 %v984_v46  ;;  %v3066_v46 = vand.u32 4294901760, %v1659_v44  ;;  %v1757_v55 = vsub.f32 %v3056_v42, %v1756_v47 }
  0xb1   :  { %1266 = vmatprep.mubr.f32.mxu0 %v2596_v4  ;;  %1377 = vmatprep.mubr.f32.mxu1 %v2596_v4 }
  0xb2   :  { %v3084_v52 = vsub.f32 %v1659_v44, %v3066_v46  ;;  %v1758_v3 = vand.u32 4294901760, %v1757_v55 }
  0xb4   :  { %1269 = vmatmul.mubr.f32.gmra.mxu0 %v2920_v7  ;;  %1381 = vmatmul.mubr.f32.gmra.mxu1 %v995_v58  ;;  %v1778_v0 = vand.u32 4294901760, %v3084_v52 }
  0xb5   :  { %1386 = vmatprep.mubr.f32.mxu1 %v2596_v4  ;;  %1475 = vmatprep.mubr.f32.mxu0 %v2596_v4 }
  0xb6   :  { %v1779_v16 = vsub.f32 %v3084_v52, %v1778_v0 }
  0xb8   :  { %1390 = vmatmul.mubr.f32.gmra.mxu1 %v1006_v5  ;;  %1477 = vmatmul.mubr.f32.vlgmr.msra.gmra.mxu0 %v2810_v6  ;;  %v1768_v5 = vsub.f32 %v3075_v49, %v1767_v57  ;;  %v1780_v26 = vand.u32 4294901760, %v1779_v16 }
  0xb9   :  { %1395 = vmatprep.mubr.f32.mxu1 %v2596_v4  ;;  %1482 = vmatprep.mubr.f32.mxu0 %v2596_v4 }
  0xba   :  { %1709 = vmatpush1.msra.mxu0 %v2990_v2  ;;  %v1769_v23 = vand.u32 4294901760, %v1768_v5 }
  0xbb   :  { %1976 = vmatprep.subr.mxu0 %v2948_v24 }
  0xbc   :  { %1399 = vmatmul.mubr.f32.gmra.mxu1 %v1017_v13  ;;  %1484 = vmatmul.mubr.f32.gmra.mxu0 %v2822_v12 }
  0xbd   :  { %1489 = vmatprep.mubr.f32.mxu0 %v2596_v4  ;;  %1591 = vmatprep.mubr.f32.mxu1 %v2596_v4 }
  0xc0   :  { %1491 = vmatmul.mubr.f32.gmra.mxu0 %v2837_v19  ;;  %1593 = vmatmul.mubr.f32.vlgmr.msra.gmra.mxu1 %v2810_v6  ;;  %v3042_v6 = vsub.f32 %v1650_v32, %v3030_v36 }
  0xc1   :  { %1496 = vmatprep.mubr.f32.mxu0 %v2596_v4  ;;  %1598 = vmatprep.mubr.f32.mxu1 %v2596_v4 }
  0xc2   :  { %1861 = vmatpush1.msra.mxu1 %v1860_v33 }
  0xc3   :  { %2100 = vmatprep.subr.mxu1 %v2942_v21 }
  0xc4   :  { %1498 = vmatmul.mubr.f32.gmra.mxu0 %v2847_v22  ;;  %1600 = vmatmul.mubr.f32.gmra.mxu1 %v2822_v12  ;;  %v1745_v12 = vand.u32 4294901760, %v3042_v6 }
  0xc5   :  { %1503 = vmatprep.mubr.f32.mxu0 %v2596_v4  ;;  %1605 = vmatprep.mubr.f32.mxu1 %v2596_v4 }
  0xc8   :  { %1505 = vmatmul.mubr.f32.gmra.mxu0 %v2865_v34  ;;  %1607 = vmatmul.mubr.f32.gmra.mxu1 %v2837_v19  ;;  %v1746_v19 = vsub.f32 %v3042_v6, %v1745_v12 }
  0xc9   :  { %1510 = vmatprep.mubr.f32.mxu0 %v2596_v4  ;;  %1612 = vmatprep.mubr.f32.mxu1 %v2596_v4 }
  0xca   :  { %v1747_v54 = vand.u32 4294901760, %v1746_v19  ;;  %v2449_v19 = vld [vmem:[%s3498_s1] sm:$0xff] }
  0xcb   :  { %2458 = vperm.xlu0 %2570, %v2449_v19  }
  0xcc   :  { %1512 = vmatmul.mubr.f32.gmra.mxu0 %v2887_v48  ;;  %1614 = vmatmul.mubr.f32.gmra.mxu1 %v2847_v22  ;;  %v2561_v22 = vld [vmem:[%s3497_s0 + $0x98] sm:$0xff] }
  0xcd   :  { %1517 = vmatprep.mubr.f32.mxu0 %v2596_v4  ;;  %1619 = vmatprep.mubr.f32.mxu1 %v2596_v4  ;;  %v169_v51 = vpop.f32.mrf.mxu0  ;;  %v1665_v60 = vsel %vm69_vm1, %v2561_v22, 0 }
  0xce   :  { %v3112_v9 = vand.u32 4294901760, %v1665_v60 }
  0xcf   :  { %v171_v56 = vpop.f32.mrf.mxu0 }
  0xd0   :  { %1519 = vmatmul.mubr.f32.gmra.mxu0 %v2905_v59  ;;  %1621 = vmatmul.mubr.f32.gmra.mxu1 %v2865_v34  ;;  %v2562_v34 = vld [vmem:[%s3497_s0 + $0xa0] sm:$0xff] }
  0xd1   :  { %1626 = vmatprep.mubr.f32.mxu1 %v2596_v4  ;;  %1742 = vmatprep.mubr.f32.mxu0 %v2596_v4  ;;  %v317_v58 = vpop.f32.mrf.mxu1  ;;  %v1668_v13 = vsel %vm69_vm1, %v2562_v34, 0  ;;  %v2451_v34 = vld [vmem:[%s3498_s1 + $0x10] sm:$0xff] }
  0xd2   :  { %v3097_v61 = vadd.f32 %v317_v58, %v169_v51  ;;  %v180_v62 = vpop.f32.mrf.mxu0  ;;  %v3132_v29 = vand.u32 4294901760, %v1668_v13  ;;  %2468 = vperm.xlu1 %2571, %v2451_v34  }
  0xd3   :  { %v319_v63 = vpop.f32.mrf.mxu1 }
  0xd4   :  { %1628 = vmatmul.mubr.f32.gmra.mxu1 %v2887_v48  ;;  %1748 = vmatmul.mubr.f32.vlgmr.msra.gmra.mxu0 %v1747_v54  ;;  %v3110_v7 = vadd.f32 %v319_v63, %v171_v56  ;;  %v182_v8 = vpop.f32.mrf.mxu0  ;;  %v3146_v37 = vsub.f32 %v1668_v13, %v3132_v29 }
  0xd5   :  { %1979 = vmatpush1.msra.mxu0 %v2998_v15  ;;  %1633 = vmatprep.mubr.f32.mxu1 %v2596_v4  ;;  %v324_v11 = vpop.f32.mrf.mxu1 }
  0xd6   :  { %2232 = vmatprep.subr.mxu0 %v1852_v25  ;;  %1753 = vmatprep.mubr.f32.mxu0 %v2596_v4  ;;  %v3120_v48 = vadd.f32 %v324_v11, %v180_v62  ;;  %v191_v14 = vpop.f32.mrf.mxu0  ;;  %v3130_v25 = vsub.f32 %v1665_v60, %v3112_v9  ;;  %v1811_v55 = vand.u32 4294901760, %v3146_v37 }
  0xd7   :  { %v326_v17 = vpop.f32.mrf.mxu1 }
  0xd8   :  { %1635 = vmatmul.mubr.f32.gmra.mxu1 %v2905_v59  ;;  %1759 = vmatmul.mubr.f32.gmra.mxu0 %v1758_v3  ;;  %v3127_v28 = vadd.f32 %v326_v17, %v182_v8  ;;  %v193_v24 = vpop.f32.mrf.mxu0  ;;  %v1790_v59 = vsub.f32 %v3104_v1, %v1789_v20  ;;  %v1800_v35 = vand.u32 4294901760, %v3130_v25  ;;  %v1812_v3 = vsub.f32 %v3146_v37, %v1811_v55  ;;  %v2453_v17 = vld [vmem:[%s3498_s1 + $0x20] sm:$0xff] }
  0xd9   :  { %1764 = vmatprep.mubr.f32.mxu0 %v2596_v4  ;;  %1894 = vmatprep.mubr.f32.mxu1 %v2596_v4  ;;  %v331_v30 = vpop.f32.mrf.mxu1 }
  0xda   :  { %v3136_v31 = vadd.f32 %v331_v30, %v191_v14  ;;  %v202_v10 = vpop.f32.mrf.mxu0  ;;  %v1801_v51 = vsub.f32 %v3130_v25, %v1800_v35  ;;  %2478 = vperm.xlu1 %2571, %v2453_v17  }
  0xdb   :  { %v333_v27 = vpop.f32.mrf.mxu1 }
  0xdc   :  { %1770 = vmatmul.mubr.f32.gmra.mxu0 %v1769_v23  ;;  %1896 = vmatmul.mubr.f32.vlgmr.msra.gmra.mxu1 %v3030_v36  ;;  %v3142_v32 = vadd.f32 %v333_v27, %v193_v24  ;;  %v204_v33 = vpop.f32.mrf.mxu0  ;;  %v1802_v63 = vand.u32 4294901760, %v1801_v51  ;;  %v1813_v23 = vand.u32 4294901760, %v1812_v3 }
  0xdd   :  { %2102 = vmatpush1.msra.mxu1 %v2990_v2  ;;  %1775 = vmatprep.mubr.f32.mxu0 %v2596_v4  ;;  %v338_v38 = vpop.f32.mrf.mxu1 }
  0xde   :  { %2350 = vmatprep.subr.mxu1 %v2942_v21  ;;  %1901 = vmatprep.mubr.f32.mxu1 %v2596_v4  ;;  %v3152_v40 = vadd.f32 %v338_v38, %v202_v10  ;;  %v213_v41 = vpop.f32.mrf.mxu0  ;;  %v1791_v21 = vand.u32 4294901760, %v1790_v59 }
  0xdf   :  { %v340_v44 = vpop.f32.mrf.mxu1 }
  0xe0   :  { %1781 = vmatmul.mubr.f32.gmra.mxu0 %v1780_v26  ;;  %1903 = vmatmul.mubr.f32.gmra.mxu1 %v3044_v39  ;;  %v3164_v22 = vadd.f32 %v340_v44, %v204_v33  ;;  %v215_v54 = vpop.f32.mrf.mxu0  ;;  %v2452_v26 = vld [vmem:[%s3498_s1 + $0x18] sm:$0xff] }
  0xe1   :  { %1786 = vmatprep.mubr.f32.mxu0 %v2596_v4  ;;  %1908 = vmatprep.mubr.f32.mxu1 %v2596_v4  ;;  %v345_v56 = vpop.f32.mrf.mxu1 }
  0xe2   :  { %v3169_v58 = vadd.f32 %v345_v56, %v213_v41  ;;  %v224_v60 = vpop.f32.mrf.mxu0  ;;  %2473 = vperm.xlu0 %2570, %v2452_v26   ;;  %v2455_v41 = vld [vmem:[%s3498_s1 + $0x30] sm:$0xff]  ;;  %v2454_v56 = vld [vmem:[%s3498_s1 + $0x28] sm:$0xff]  ;;  %s2599_s1 = smov [#allocation2]  }
  0xe3   :  { %v347_v62 = vpop.f32.mrf.mxu1  ;;  %2488 = vperm.xlu1 %2571, %v2455_v41   ;;  %s2538_s15 = sshll.u32 %s2599_s1, 4  ;;  %s2539_s15 = int_to_ptr.vmem [resolvable:$true] %s2538_s15 }
  0xe4   :  { %1792 = vmatmul.mubr.f32.gmra.mxu0 %v1791_v21  ;;  %1910 = vmatmul.mubr.f32.gmra.mxu1 %v3058_v43  ;;  %v3178_v5 = vadd.f32 %v347_v62, %v215_v54  ;;  %v226_v8 = vpop.f32.mrf.mxu0  ;;  %s2573_s16 = scalar_lea.vmem %s2539_s15, 1792  ;;  %p2578_p1 = scmp.lt.s32.totalorder %s2539_s15, %s2539_s15 }
  0xe5   :  { %1797 = vmatprep.mubr.f32.mxu0 %v2596_v4  ;;  %1915 = vmatprep.mubr.f32.mxu1 %v2596_v4  ;;  %v352_v11 = vpop.f32.mrf.mxu1  ;;  %p2574_p0 = scmp.ne.s32.totalorder %s2539_s15, %s2573_s16  ;;  %p2579_p2 = scmp.lt.s32.totalorder %s2573_s16, %s2573_s16 }
  0xe6   :  { %v3182_v13 = vadd.f32 %v352_v11, %v224_v60  ;;  %v235_v14 = vpop.f32.mrf.mxu0  ;;  %2483 = vperm.xlu0 %2570, %v2454_v56  }
  0xe7   :  { %v354_v16 = vpop.f32.mrf.mxu1  ;;  %p2580_p3 = por %p2579_p2, %p2578_p1 }
  0xe8   :  { %1803 = vmatmul.mubr.f32.gmra.mxu0 %v1802_v63  ;;  %1917 = vmatmul.mubr.f32.gmra.mxu1 %v3066_v46  ;;  %v3188_v24 = vadd.f32 %v354_v16, %v226_v8  ;;  %v237_v30 = vpop.f32.mrf.mxu0 }
  0xe9   :  { %1808 = vmatprep.mubr.f32.mxu0 %v2596_v4  ;;  %1922 = vmatprep.mubr.f32.mxu1 %v2596_v4  ;;  %v359_v10 = vpop.f32.mrf.mxu1  ;;  %p2581_p4 = pnand %p2580_p3, %p2574_p0 }
  0xea   :  { %v3195_v59 = vadd.f32 %v359_v10, %v235_v14  ;;  %v436_v27 = vpop.f32.mrf.mxu0 }
  0xeb   :  { %v361_v33 = vpop.f32.mrf.mxu1  ;;  %v437_v38 = vadd.f32 %v436_v27, %v3097_v61 }
  0xec   :  { %1814 = vmatmul.mubr.f32.gmra.mxu0 %v1813_v23  ;;  %1924 = vmatmul.mubr.f32.gmra.mxu1 %v3086_v53  ;;  %v3202_v44 = vadd.f32 %v361_v33, %v237_v30  ;;  %v438_v45 = vpop.f32.mrf.mxu0 }
  0xed   :  { %1929 = vmatprep.mubr.f32.mxu1 %v2596_v4  ;;  %2012 = vmatprep.mubr.f32.mxu0 %v2596_v4  ;;  %v439_v19 = vadd.f32 %v438_v45, %v3110_v7  ;;  %v560_v50 = vpop.f32.mrf.mxu1 }
  0xee   :  { %v3207_v21 = vadd.f32 %v560_v50, %v437_v38  ;;  %v444_v61 = vpop.f32.mrf.mxu0 }
  0xef   :  { %v445_v51 = vadd.f32 %v444_v61, %v3120_v48  ;;  %v562_v54 = vpop.f32.mrf.mxu1 }
  0xf0   :  { %1931 = vmatmul.mubr.f32.gmra.mxu1 %v3112_v9  ;;  %2015 = vmatmul.mubr.f32.vlgmr.msra.gmra.mxu0 %v3042_v6  ;;  %v3215_v60 = vadd.f32 %v562_v54, %v439_v19  ;;  %v446_v62 = vpop.f32.mrf.mxu0 }
  0xf1   :  { %2236 = vmatpush1.msra.mxu0 %v1858_v18  ;;  %1936 = vmatprep.mubr.f32.mxu1 %v2596_v4  ;;  %v447_v7 = vadd.f32 %v446_v62, %v3127_v28  ;;  %v569_v48 = vpop.f32.mrf.mxu1 }
  0xf2   :  { %2020 = vmatprep.mubr.f32.mxu0 %v2596_v4  ;;  %v3222_v34 = vadd.f32 %v569_v48, %v445_v51  ;;  %v452_v63 = vpop.f32.mrf.mxu0 }
  0xf3   :  { %v453_v3 = vadd.f32 %v452_v63, %v3136_v31  ;;  %v571_v8 = vpop.f32.mrf.mxu1 }
  0xf4   :  { %1938 = vmatmul.mubr.f32.gmra.mxu1 %v3132_v29  ;;  %2023 = vmatmul.mubr.f32.gmra.mxu0 %v3056_v42  ;;  %v3227_v15 = vadd.f32 %v571_v8, %v447_v7  ;;  %v454_v18 = vpop.f32.mrf.mxu0 }
  0xf5   :  { %2028 = vmatprep.mubr.f32.mxu0 %v2596_v4  ;;  %2135 = vmatprep.mubr.f32.mxu1 %v2596_v4  ;;  %v455_v28 = vadd.f32 %v454_v18, %v3142_v32  ;;  %v578_v11 = vpop.f32.mrf.mxu1 }
  0xf6   :  { %v3232_v14 = vadd.f32 %v578_v11, %v453_v3  ;;  %v460_v16 = vpop.f32.mrf.mxu0 }
  0xf7   :  { %v461_v31 = vadd.f32 %v460_v16, %v3152_v40  ;;  %v580_v17 = vpop.f32.mrf.mxu1 }
  0xf8   :  { %2031 = vmatmul.mubr.f32.gmra.mxu0 %v3075_v49  ;;  %2139 = vmatmul.mubr.f32.vlgmr.msra.gmra.mxu1 %v1745_v12  ;;  %v3238_v23 = vadd.f32 %v580_v17, %v455_v28  ;;  %v462_v30 = vpop.f32.mrf.mxu0 }
  0xf9   :  { %2352 = vmatpush1.msra.mxu1 %v2990_v2  ;;  %2036 = vmatprep.mubr.f32.mxu0 %v2596_v4  ;;  %v463_v32 = vadd.f32 %v462_v30, %v3164_v22  ;;  %v587_v10 = vpop.f32.mrf.mxu1 }
  0xfa   :  { %2144 = vmatprep.mubr.f32.mxu1 %v2596_v4  ;;  %v3244_v26 = vadd.f32 %v587_v10, %v461_v31  ;;  %v468_v40 = vpop.f32.mrf.mxu0 }
  0xfb   :  { %v469_v27 = vadd.f32 %v468_v40, %v3169_v58  ;;  %v589_v33 = vpop.f32.mrf.mxu1 }
  0xfc   :  { %2039 = vmatmul.mubr.f32.gmra.mxu0 %v3084_v52  ;;  %2148 = vmatmul.mubr.f32.gmra.mxu1 %v1756_v47  ;;  %v3250_v6 = vadd.f32 %v589_v33, %v463_v32  ;;  %v470_v2 = vpop.f32.mrf.mxu0 }
  0xfd   :  { %2044 = vmatprep.mubr.f32.mxu0 %v2596_v4  ;;  %2153 = vmatprep.mubr.f32.mxu1 %v2596_v4  ;;  %v471_v12 = vadd.f32 %v470_v2, %v3178_v5  ;;  %v596_v22 = vpop.f32.mrf.mxu1 }
  0xfe   :  { %v3255_v38 = vadd.f32 %v596_v22, %v469_v27  ;;  %v476_v41 = vpop.f32.mrf.mxu0 }
  0xff   :  { %v477_v58 = vadd.f32 %v476_v41, %v3182_v13  ;;  %v598_v45 = vpop.f32.mrf.mxu1 }
 0x100   :  { %2047 = vmatmul.mubr.f32.gmra.mxu0 %v3104_v1  ;;  %2157 = vmatmul.mubr.f32.gmra.mxu1 %v1767_v57  ;;  %v3261_v42 = vadd.f32 %v598_v45, %v471_v12  ;;  %v478_v47 = vpop.f32.mrf.mxu0 }
 0x101   :  { %2052 = vmatprep.mubr.f32.mxu0 %v2596_v4  ;;  %2162 = vmatprep.mubr.f32.mxu1 %v2596_v4  ;;  %v479_v5 = vadd.f32 %v478_v47, %v3188_v24  ;;  %v605_v19 = vpop.f32.mrf.mxu1 }
 0x102   :  { %v3266_v50 = vadd.f32 %v605_v19, %v477_v58  ;;  %v484_v61 = vpop.f32.mrf.mxu0 }
 0x103   :  { %v485_v13 = vadd.f32 %v484_v61, %v3195_v59  ;;  %v607_v51 = vpop.f32.mrf.mxu1 }
 0x104   :  { %2055 = vmatmul.mubr.f32.gmra.mxu0 %v3130_v25  ;;  %2166 = vmatmul.mubr.f32.gmra.mxu1 %v1778_v0  ;;  %v3272_v49 = vadd.f32 %v607_v51, %v479_v5  ;;  %v486_v57 = vpop.f32.mrf.mxu0 }
 0x105   :  { %2060 = vmatprep.mubr.f32.mxu0 %v2596_v4  ;;  %2171 = vmatprep.mubr.f32.mxu1 %v2596_v4  ;;  %v487_v24 = vadd.f32 %v486_v57, %v3202_v44  ;;  %v614_v54 = vpop.f32.mrf.mxu1 }
 0x106   :  { %v3277_v56 = vadd.f32 %v614_v54, %v485_v13  ;;  %v692_v62 = vpop.f32.mrf.mxu0 }
 0x107   :  { %v616_v59 = vpop.f32.mrf.mxu1  ;;  %v693_v7 = vadd.f32 %v692_v62, %v3207_v21 }
 0x108   :  { %2063 = vmatmul.mubr.f32.gmra.mxu0 %v3146_v37  ;;  %2175 = vmatmul.mubr.f32.gmra.mxu1 %v1789_v20  ;;  %v3283_v52 = vadd.f32 %v616_v59, %v487_v24  ;;  %v694_v0 = vpop.f32.mrf.mxu0 }
 0x109   :  { %2180 = vmatprep.mubr.f32.mxu1 %v2596_v4  ;;  %2269 = vmatprep.mubr.f32.mxu0 %v2596_v4  ;;  %v695_v44 = vadd.f32 %v694_v0, %v3215_v60  ;;  %v808_v48 = vpop.f32.mrf.mxu1 }
 0x10a   :  { %v3288_v63 = vadd.f32 %v808_v48, %v693_v7  ;;  %v699_v3 = vpop.f32.mrf.mxu0 }
 0x10b   :  { %v700_v21 = vadd.f32 %v699_v3, %v3222_v34  ;;  %v810_v8 = vpop.f32.mrf.mxu1 }
 0x10c   :  { %2184 = vmatmul.mubr.f32.gmra.mxu1 %v1800_v35  ;;  %2271 = vmatmul.mubr.f32.vlgmr.msra.gmra.mxu0 %v3030_v36  ;;  %v3294_v1 = vadd.f32 %v810_v8, %v695_v44  ;;  %v701_v20 = vpop.f32.mrf.mxu0 }
 0x10d   :  { %2189 = vmatprep.mubr.f32.mxu1 %v2596_v4  ;;  %2276 = vmatprep.mubr.f32.mxu0 %v2596_v4  ;;  %v702_v60 = vadd.f32 %v701_v20, %v3227_v15  ;;  %v815_v18 = vpop.f32.mrf.mxu1 }
 0x10e   :  { %v3299_v28 = vadd.f32 %v815_v18, %v700_v21  ;;  %v706_v11 = vpop.f32.mrf.mxu0 }
 0x10f   :  { %v707_v34 = vadd.f32 %v706_v11, %v3232_v14  ;;  %v817_v16 = vpop.f32.mrf.mxu1 }
 0x110   :  { %2193 = vmatmul.mubr.f32.gmra.mxu1 %v1811_v55  ;;  %2278 = vmatmul.mubr.f32.gmra.mxu0 %v3044_v39  ;;  %v3305_v25 = vadd.f32 %v817_v16, %v702_v60  ;;  %v708_v35 = vpop.f32.mrf.mxu0 }
 0x111   :  { %2283 = vmatprep.mubr.f32.mxu0 %v2596_v4  ;;  %2385 = vmatprep.mubr.f32.mxu1 %v2596_v4  ;;  %v709_v15 = vadd.f32 %v708_v35, %v3238_v23  ;;  %v822_v31 = vpop.f32.mrf.mxu1 }
 0x112   :  { %v3310_v17 = vadd.f32 %v822_v31, %v707_v34  ;;  %v713_v30 = vpop.f32.mrf.mxu0 }
 0x113   :  { %v714_v14 = vadd.f32 %v713_v30, %v3244_v26  ;;  %v824_v32 = vpop.f32.mrf.mxu1 }
 0x114   :  { %2285 = vmatmul.mubr.f32.gmra.mxu0 %v3058_v43  ;;  %2387 = vmatmul.mubr.f32.vlgmr.msra.gmra.mxu1 %v3030_v36  ;;  %v3315_v37 = vadd.f32 %v824_v32, %v709_v15  ;;  %v715_v55 = vpop.f32.mrf.mxu0 }
 0x115   :  { %2290 = vmatprep.mubr.f32.mxu0 %v2596_v4  ;;  %2392 = vmatprep.mubr.f32.mxu1 %v2596_v4  ;;  %v716_v23 = vadd.f32 %v715_v55, %v3250_v6  ;;  %v829_v10 = vpop.f32.mrf.mxu1 }
 0x116   :  { %v3320_v40 = vadd.f32 %v829_v10, %v714_v14  ;;  %v720_v27 = vpop.f32.mrf.mxu0 }
 0x117   :  { %v721_v26 = vadd.f32 %v720_v27, %v3255_v38  ;;  %v831_v33 = vpop.f32.mrf.mxu1 }
 0x118   :  { %2292 = vmatmul.mubr.f32.gmra.mxu0 %v3066_v46  ;;  %2394 = vmatmul.mubr.f32.gmra.mxu1 %v3044_v39  ;;  %v832_v36 = vadd.f32 %v831_v33, %v716_v23  ;;  %v722_v2 = vpop.f32.mrf.mxu0 }
 0x119   :  { %2297 = vmatprep.mubr.f32.mxu0 %v2596_v4  ;;  %2399 = vmatprep.mubr.f32.mxu1 %v2596_v4  ;;  %v723_v12 = vadd.f32 %v722_v2, %v3261_v42  ;;  %v836_v6 = vpop.f32.mrf.mxu1 }
 0x11a   :  { %v837_v22 = vadd.f32 %v836_v6, %v721_v26  ;;  %v727_v41 = vpop.f32.mrf.mxu0 }
 0x11b   :  { %v728_v58 = vadd.f32 %v727_v41, %v3266_v50  ;;  %v838_v45 = vpop.f32.mrf.mxu1 }
 0x11c   :  { %2299 = vmatmul.mubr.f32.gmra.mxu0 %v3086_v53  ;;  %2401 = vmatmul.mubr.f32.gmra.mxu1 %v3058_v43  ;;  %v839_v38 = vadd.f32 %v838_v45, %v723_v12  ;;  %v729_v39 = vpop.f32.mrf.mxu0 }
 0x11d   :  { %2304 = vmatprep.mubr.f32.mxu0 %v2596_v4  ;;  %2406 = vmatprep.mubr.f32.mxu1 %v2596_v4  ;;  %v730_v47 = vadd.f32 %v729_v39, %v3272_v49  ;;  %v843_v5 = vpop.f32.mrf.mxu1 }
 0x11e   :  { %v844_v42 = vadd.f32 %v843_v5, %v728_v58  ;;  %v734_v19 = vpop.f32.mrf.mxu0 }
 0x11f   :  { %v735_v61 = vadd.f32 %v734_v19, %v3277_v56  ;;  %v845_v13 = vpop.f32.mrf.mxu1 }
 0x120   :  { %2306 = vmatmul.mubr.f32.gmra.mxu0 %v3112_v9  ;;  %2408 = vmatmul.mubr.f32.gmra.mxu1 %v3066_v46  ;;  %v846_v50 = vadd.f32 %v845_v13, %v730_v47  ;;  %v736_v43 = vpop.f32.mrf.mxu0 }
 0x121   :  { %2311 = vmatprep.mubr.f32.mxu0 %v2596_v4  ;;  %2413 = vmatprep.mubr.f32.mxu1 %v2596_v4  ;;  %v737_v51 = vadd.f32 %v736_v43, %v3283_v52  ;;  %v850_v57 = vpop.f32.mrf.mxu1 }
 0x122   :  { %v851_v49 = vadd.f32 %v850_v57, %v735_v61 }
 0x123   :  { %v852_v24 = vpop.f32.mrf.mxu1 }
 0x124   :  { %2313 = vmatmul.mubr.f32.gmra.mxu0 %v3132_v29  ;;  %2415 = vmatmul.mubr.f32.gmra.mxu1 %v3086_v53  ;;  %v853_v54 = vadd.f32 %v852_v24, %v737_v51 }
 0x125   :  { %2420 = vmatprep.mubr.f32.mxu1 %v2596_v4 }
 0x128   :  { %2422 = vmatmul.mubr.f32.gmra.mxu1 %v3112_v9 }
 0x129   :  { %2427 = vmatprep.mubr.f32.mxu1 %v2596_v4 }
 0x12c   :  { %2429 = vmatmul.mubr.f32.gmra.mxu1 %v3132_v29 }
 0x140   :  { %v955_v46 = vpop.f32.mrf.mxu0 }
 0x141   :  { %v956_v56 = vadd.f32 %v955_v46, %v3288_v63 }
 0x142   :  { %v957_v62 = vpop.f32.mrf.mxu0 }
 0x143   :  { %v958_v59 = vadd.f32 %v957_v62, %v3294_v1 }
 0x144   :  { %v966_v7 = vpop.f32.mrf.mxu0 }
 0x145   :  { %v967_v52 = vadd.f32 %v966_v7, %v3299_v28 }
 0x146   :  { %v968_v0 = vpop.f32.mrf.mxu0 }
 0x147   :  { %v969_v53 = vadd.f32 %v968_v0, %v3305_v25 }
 0x148   :  { %v977_v44 = vpop.f32.mrf.mxu0  ;;  %v1103_v48 = vpop.f32.mrf.mxu1 }
 0x149   :  { %v978_v9 = vadd.f32 %v977_v44, %v3310_v17  ;;  %v1104_v3 = vadd.f32 %v1103_v48, %v956_v56 }
 0x14a   :  { %v979_v4 = vpop.f32.mrf.mxu0  ;;  %v1105_v21 = vpop.f32.mrf.mxu1 }
 0x14b   :  { %v980_v29 = vadd.f32 %v979_v4, %v3315_v37  ;;  %v1106_v8 = vadd.f32 %v1105_v21, %v958_v59 }
 0x14c   :  { %v988_v63 = vpop.f32.mrf.mxu0  ;;  %v1110_v20 = vpop.f32.mrf.mxu1 }
 0x14d   :  { %v989_v1 = vadd.f32 %v988_v63, %v3320_v40  ;;  %v1111_v60 = vadd.f32 %v1110_v20, %v967_v52 }
 0x14e   :  { %v990_v18 = vpop.f32.mrf.mxu0  ;;  %v1112_v28 = vpop.f32.mrf.mxu1 }
 0x14f   :  { %v991_v11 = vadd.f32 %v990_v18, %v832_v36  ;;  %v1113_v34 = vadd.f32 %v1112_v28, %v969_v53 }
 0x150   :  { %v999_v16 = vpop.f32.mrf.mxu0  ;;  %v1117_v25 = vpop.f32.mrf.mxu1 }
 0x151   :  { %v1000_v35 = vadd.f32 %v999_v16, %v837_v22  ;;  %v1118_v15 = vadd.f32 %v1117_v25, %v978_v9 }
 0x152   :  { %v1001_v31 = vpop.f32.mrf.mxu0  ;;  %v1119_v17 = vpop.f32.mrf.mxu1 }
 0x153   :  { %v1002_v30 = vadd.f32 %v1001_v31, %v839_v38  ;;  %v1120_v14 = vadd.f32 %v1119_v17, %v980_v29 }
 0x154   :  { %v1010_v32 = vpop.f32.mrf.mxu0  ;;  %v1124_v37 = vpop.f32.mrf.mxu1 }
 0x155   :  { %v1011_v55 = vadd.f32 %v1010_v32, %v844_v42  ;;  %v1125_v23 = vadd.f32 %v1124_v37, %v989_v1 }
 0x156   :  { %v1012_v10 = vpop.f32.mrf.mxu0  ;;  %v1126_v27 = vpop.f32.mrf.mxu1 }
 0x157   :  { %v1013_v40 = vadd.f32 %v1012_v10, %v846_v50  ;;  %v1127_v26 = vadd.f32 %v1126_v27, %v991_v11 }
 0x158   :  { %v1021_v33 = vpop.f32.mrf.mxu0  ;;  %v1131_v2 = vpop.f32.mrf.mxu1 }
 0x159   :  { %v1022_v36 = vadd.f32 %v1021_v33, %v851_v49  ;;  %v1132_v12 = vadd.f32 %v1131_v2, %v1000_v35 }
 0x15a   :  { %v1023_v6 = vpop.f32.mrf.mxu0  ;;  %v1133_v41 = vpop.f32.mrf.mxu1 }
 0x15b   :  { %v1024_v22 = vadd.f32 %v1023_v6, %v853_v54  ;;  %v1134_v58 = vadd.f32 %v1133_v41, %v1002_v30 }
 0x15c   :  { %v1138_v45 = vpop.f32.mrf.mxu1  ;;  %v1222_v39 = vpop.f32.mrf.mxu0 }
 0x15d   :  { %v1139_v38 = vadd.f32 %v1138_v45, %v1011_v55  ;;  %v1223_v47 = vadd.f32 %v1222_v39, %v1104_v3 }
 0x15e   :  { %v1140_v5 = vpop.f32.mrf.mxu1  ;;  %v1224_v19 = vpop.f32.mrf.mxu0 }
 0x15f   :  { %v1141_v42 = vadd.f32 %v1140_v5, %v1013_v40  ;;  %v1225_v61 = vadd.f32 %v1224_v19, %v1106_v8 }
 0x160   :  { %v1145_v13 = vpop.f32.mrf.mxu1  ;;  %v1230_v43 = vpop.f32.mrf.mxu0 }
 0x161   :  { %v1146_v50 = vadd.f32 %v1145_v13, %v1022_v36  ;;  %v1231_v51 = vadd.f32 %v1230_v43, %v1111_v60 }
 0x162   :  { %v1147_v57 = vpop.f32.mrf.mxu1  ;;  %v1232_v24 = vpop.f32.mrf.mxu0 }
 0x163   :  { %v1148_v49 = vadd.f32 %v1147_v57, %v1024_v22  ;;  %v1233_v46 = vadd.f32 %v1232_v24, %v1113_v34 }
 0x164   :  { %v1238_v56 = vpop.f32.mrf.mxu0  ;;  %v1346_v62 = vpop.f32.mrf.mxu1 }
 0x165   :  { %v1239_v54 = vadd.f32 %v1238_v56, %v1118_v15  ;;  %v1347_v59 = vadd.f32 %v1346_v62, %v1223_v47 }
 0x166   :  { %v1240_v7 = vpop.f32.mrf.mxu0  ;;  %v1348_v52 = vpop.f32.mrf.mxu1 }
 0x167   :  { %v1241_v0 = vadd.f32 %v1240_v7, %v1120_v14  ;;  %v1349_v53 = vadd.f32 %v1348_v52, %v1225_v61 }
 0x168   :  { %v1246_v44 = vpop.f32.mrf.mxu0  ;;  %v1355_v48 = vpop.f32.mrf.mxu1 }
 0x169   :  { %v1247_v9 = vadd.f32 %v1246_v44, %v1125_v23  ;;  %v1356_v3 = vadd.f32 %v1355_v48, %v1231_v51 }
 0x16a   :  { %v1248_v4 = vpop.f32.mrf.mxu0  ;;  %v1357_v21 = vpop.f32.mrf.mxu1 }
 0x16b   :  { %v1249_v29 = vadd.f32 %v1248_v4, %v1127_v26  ;;  %v1358_v8 = vadd.f32 %v1357_v21, %v1233_v46 }
 0x16c   :  { %v1254_v63 = vpop.f32.mrf.mxu0  ;;  %v1364_v20 = vpop.f32.mrf.mxu1 }
 0x16d   :  { %v1255_v1 = vadd.f32 %v1254_v63, %v1132_v12  ;;  %v1365_v60 = vadd.f32 %v1364_v20, %v1239_v54 }
 0x16e   :  { %v1256_v18 = vpop.f32.mrf.mxu0  ;;  %v1366_v28 = vpop.f32.mrf.mxu1 }
 0x16f   :  { %v1257_v11 = vadd.f32 %v1256_v18, %v1134_v58  ;;  %v1367_v34 = vadd.f32 %v1366_v28, %v1241_v0 }
 0x170   :  { %v1262_v16 = vpop.f32.mrf.mxu0  ;;  %v1373_v25 = vpop.f32.mrf.mxu1 }
 0x171   :  { %v1263_v35 = vadd.f32 %v1262_v16, %v1139_v38  ;;  %v1374_v15 = vadd.f32 %v1373_v25, %v1247_v9 }
 0x172   :  { %v1264_v31 = vpop.f32.mrf.mxu0  ;;  %v1375_v17 = vpop.f32.mrf.mxu1 }
 0x173   :  { %v1265_v30 = vadd.f32 %v1264_v31, %v1141_v42  ;;  %v1376_v14 = vadd.f32 %v1375_v17, %v1249_v29 }
 0x174   :  { %v1270_v32 = vpop.f32.mrf.mxu0  ;;  %v1382_v37 = vpop.f32.mrf.mxu1 }
 0x175   :  { %v1271_v55 = vadd.f32 %v1270_v32, %v1146_v50  ;;  %v1383_v23 = vadd.f32 %v1382_v37, %v1255_v1 }
 0x176   :  { %v1272_v10 = vpop.f32.mrf.mxu0  ;;  %v1384_v27 = vpop.f32.mrf.mxu1 }
 0x177   :  { %v1273_v40 = vadd.f32 %v1272_v10, %v1148_v49  ;;  %v1385_v26 = vadd.f32 %v1384_v27, %v1257_v11 }
 0x178   :  { %v1391_v33 = vpop.f32.mrf.mxu1  ;;  %v1478_v2 = vpop.f32.mrf.mxu0 }
 0x179   :  { %v1392_v36 = vadd.f32 %v1391_v33, %v1263_v35  ;;  %v1479_v12 = vadd.f32 %v1478_v2, %v1347_v59 }
 0x17a   :  { %v1393_v6 = vpop.f32.mrf.mxu1  ;;  %v1480_v41 = vpop.f32.mrf.mxu0 }
 0x17b   :  { %v1394_v22 = vadd.f32 %v1393_v6, %v1265_v30  ;;  %v1481_v58 = vadd.f32 %v1480_v41, %v1349_v53 }
 0x17c   :  { %v1400_v45 = vpop.f32.mrf.mxu1  ;;  %v1485_v39 = vpop.f32.mrf.mxu0 }
 0x17d   :  { %v1401_v38 = vadd.f32 %v1400_v45, %v1271_v55  ;;  %v1486_v47 = vadd.f32 %v1485_v39, %v1356_v3 }
 0x17e   :  { %v1402_v5 = vpop.f32.mrf.mxu1  ;;  %v1487_v19 = vpop.f32.mrf.mxu0 }
 0x17f   :  { %v1403_v42 = vadd.f32 %v1402_v5, %v1273_v40  ;;  %v1488_v61 = vadd.f32 %v1487_v19, %v1358_v8 }
 0x180   :  { %v1492_v13 = vpop.f32.mrf.mxu0  ;;  %v1594_v43 = vpop.f32.mrf.mxu1 }
 0x181   :  { %v1493_v50 = vadd.f32 %v1492_v13, %v1365_v60  ;;  %v3353_v51 = vadd.f32 %v1594_v43, %v1479_v12 }
 0x182   :  { %v1494_v57 = vpop.f32.mrf.mxu0  ;;  %v1596_v24 = vpop.f32.mrf.mxu1 }
 0x183   :  { %v1495_v49 = vadd.f32 %v1494_v57, %v1367_v34  ;;  %v3355_v46 = vadd.f32 %v1596_v24, %v1481_v58 }
 0x184   :  { %v1499_v56 = vpop.f32.mrf.mxu0  ;;  %v1601_v62 = vpop.f32.mrf.mxu1 }
 0x185   :  { %v1500_v54 = vadd.f32 %v1499_v56, %v1374_v15  ;;  %v3357_v59 = vadd.f32 %v1601_v62, %v1486_v47 }
 0x186   :  { %v1501_v7 = vpop.f32.mrf.mxu0  ;;  %v1603_v52 = vpop.f32.mrf.mxu1 }
 0x187   :  { %v1502_v0 = vadd.f32 %v1501_v7, %v1376_v14  ;;  %v3359_v53 = vadd.f32 %v1603_v52, %v1488_v61 }
 0x188   :  { %v1506_v44 = vpop.f32.mrf.mxu0  ;;  %v1608_v48 = vpop.f32.mrf.mxu1 }
 0x189   :  { %v1507_v9 = vadd.f32 %v1506_v44, %v1383_v23  ;;  %v3361_v3 = vadd.f32 %v1608_v48, %v1493_v50 }
 0x18a   :  { %v1508_v4 = vpop.f32.mrf.mxu0  ;;  %v1610_v21 = vpop.f32.mrf.mxu1 }
 0x18b   :  { %v1509_v29 = vadd.f32 %v1508_v4, %v1385_v26  ;;  %v3363_v8 = vadd.f32 %v1610_v21, %v1495_v49 }
 0x18c   :  { %v1513_v63 = vpop.f32.mrf.mxu0  ;;  %v1615_v20 = vpop.f32.mrf.mxu1 }
 0x18d   :  { %3503 = vst [vmem:[#allocation5_spill] sm:$0xff] %v3363_v8  ;;  %v1514_v1 = vadd.f32 %v1513_v63, %v1392_v36  ;;  %v3365_v60 = vadd.f32 %v1615_v20, %v1500_v54 }
 0x18e   :  { %v1515_v18 = vpop.f32.mrf.mxu0  ;;  %v1617_v28 = vpop.f32.mrf.mxu1 }
 0x18f   :  { %3504 = vst [vmem:[#allocation6_spill] sm:$0xff] %v3365_v60  ;;  %v1516_v11 = vadd.f32 %v1515_v18, %v1394_v22  ;;  %v3367_v34 = vadd.f32 %v1617_v28, %v1502_v0 }
 0x190   :  { %v1520_v16 = vpop.f32.mrf.mxu0  ;;  %v1622_v25 = vpop.f32.mrf.mxu1 }
 0x191   :  { %3505 = vst [vmem:[#allocation7_spill] sm:$0xff] %v3367_v34  ;;  %v1521_v35 = vadd.f32 %v1520_v16, %v1401_v38  ;;  %v3369_v15 = vadd.f32 %v1622_v25, %v1507_v9 }
 0x192   :  { %v1522_v31 = vpop.f32.mrf.mxu0  ;;  %v1624_v17 = vpop.f32.mrf.mxu1 }
 0x193   :  { %3506 = vst [vmem:[#allocation8_spill] sm:$0xff] %v3369_v15  ;;  %v1523_v30 = vadd.f32 %v1522_v31, %v1403_v42  ;;  %v3371_v14 = vadd.f32 %v1624_v17, %v1509_v29 }
 0x194   :  { %v1629_v32 = vpop.f32.mrf.mxu1  ;;  %v1749_v37 = vpop.f32.mrf.mxu0 }
 0x195   :  { %3507 = vst [vmem:[#allocation9_spill] sm:$0xff] %v3371_v14  ;;  %v3373_v55 = vadd.f32 %v1629_v32, %v1514_v1 }
 0x196   :  { %v1631_v23 = vpop.f32.mrf.mxu1  ;;  %v1751_v10 = vpop.f32.mrf.mxu0 }
 0x197   :  { %3508 = vst [vmem:[#allocation10_spill] sm:$0xff] %v3373_v55  ;;  %v3375_v27 = vadd.f32 %v1631_v23, %v1516_v11 }
 0x198   :  { %v1636_v40 = vpop.f32.mrf.mxu1  ;;  %v1760_v26 = vpop.f32.mrf.mxu0 }
 0x199   :  { %3509 = vst [vmem:[#allocation11_spill] sm:$0xff] %v3375_v27  ;;  %v3377_v33 = vadd.f32 %v1636_v40, %v1521_v35 }
 0x19a   :  { %v1638_v2 = vpop.f32.mrf.mxu1  ;;  %v3379_v36 = vpop.f32.mrf.mxu0 }
 0x19b   :  { %3510 = vst [vmem:[#allocation12_spill] sm:$0xff] %v3377_v33  ;;  %v3381_v12 = vadd.f32 %v1638_v2, %v1523_v30 }
 0x19c   :  { %v3383_v6 = vpop.f32.mrf.mxu0  ;;  %v1897_v41 = vpop.f32.mrf.mxu1 }
 0x19d   :  { %3511 = vst [vmem:[#allocation13_spill] sm:$0xff] %v3381_v12  ;;  %v1898_v14 = vadd.f32 %v1897_v41, %v1749_v37 }
 0x19e   :  { %v3385_v22 = vpop.f32.mrf.mxu0  ;;  %v1899_v58 = vpop.f32.mrf.mxu1 }
 0x1a0   :  { %v3387_v45 = vpop.f32.mrf.mxu0  ;;  %v1904_v39 = vpop.f32.mrf.mxu1 }
 0x1a2   :  { %v3389_v38 = vpop.f32.mrf.mxu0  ;;  %v1906_v47 = vpop.f32.mrf.mxu1 }
 0x1a4   :  { %v3391_v5 = vpop.f32.mrf.mxu0  ;;  %v1911_v19 = vpop.f32.mrf.mxu1 }
 0x1a6   :  { %v3393_v42 = vpop.f32.mrf.mxu0  ;;  %v1913_v61 = vpop.f32.mrf.mxu1 }
 0x1a8   :  { %v3395_v13 = vpop.f32.mrf.mxu0  ;;  %v3397_v43 = vpop.f32.mrf.mxu1 }
 0x1aa   :  { %v3399_v50 = vpop.f32.mrf.mxu0  ;;  %v3401_v57 = vpop.f32.mrf.mxu1 }
 0x1ac   :  { %v3403_v24 = vpop.f32.mrf.mxu0  ;;  %v3405_v49 = vpop.f32.mrf.mxu1 }
 0x1ad   :  { %3512 = vst [vmem:[#allocation14_spill] sm:$0xff] %v3403_v24  ;;  %v1905_v24 = vadd.f32 %v1904_v39, %v1760_v26  ;;  %v1914_v26 = vadd.f32 %v1913_v61, %v3385_v22 }
 0x1ae   :  { %v3407_v56 = vpop.f32.mrf.mxu0  ;;  %v3409_v62 = vpop.f32.mrf.mxu1 }
 0x1af   :  { %3513 = vst [vmem:[#allocation15_spill] sm:$0xff] %v3407_v56 }
 0x1b0   :  { %v3411_v54 = vpop.f32.mrf.mxu1  ;;  %v2016_v7 = vpop.f32.mrf.mxu0 }
 0x1b1   :  { %v2017_v56 = vadd.f32 %v2016_v7, %v1898_v14  ;;  %v2459_v7 = vpop.permute.xlu0 %2458 }
 0x1b2   :  { %v3413_v52 = vpop.f32.mrf.mxu1  ;;  %v2018_v0 = vpop.f32.mrf.mxu0 }
 0x1b4   :  { %v3415_v44 = vpop.f32.mrf.mxu1  ;;  %v2024_v48 = vpop.f32.mrf.mxu0 }
 0x1b5   :  { %3514 = vst [vmem:[#allocation16_spill] sm:$0xff] %v3415_v44  ;;  %v2025_v8 = vadd.f32 %v2024_v48, %v1905_v24 }
 0x1b6   :  { %v3417_v9 = vpop.f32.mrf.mxu1  ;;  %v2026_v4 = vpop.f32.mrf.mxu0 }
 0x1b7   :  { %3515 = vst [vmem:[#allocation17_spill] sm:$0xff] %v3417_v9  ;;  %v1900_v9 = vadd.f32 %v1899_v58, %v1751_v10 }
 0x1b8   :  { %v2032_v21 = vpop.f32.mrf.mxu0  ;;  %v2140_v29 = vpop.f32.mrf.mxu1 }
 0x1b9   :  { %v2141_v60 = vadd.f32 %v2140_v29, %v2017_v56 }
 0x1ba   :  { %v2034_v63 = vpop.f32.mrf.mxu0  ;;  %v2142_v20 = vpop.f32.mrf.mxu1 }
 0x1bc   :  { %v2040_v1 = vpop.f32.mrf.mxu0  ;;  %v2149_v18 = vpop.f32.mrf.mxu1 }
 0x1bd   :  { %v2150_v10 = vadd.f32 %v2149_v18, %v2025_v8 }
 0x1be   :  { %v3419_v28 = vpop.f32.mrf.mxu0  ;;  %v2151_v11 = vpop.f32.mrf.mxu1 }
 0x1c0   :  { %v3421_v16 = vpop.f32.mrf.mxu0  ;;  %v2158_v25 = vpop.f32.mrf.mxu1 }
 0x1c2   :  { %v3423_v35 = vpop.f32.mrf.mxu0  ;;  %v2160_v31 = vpop.f32.mrf.mxu1 }
 0x1c4   :  { %v3425_v17 = vpop.f32.mrf.mxu0  ;;  %v2167_v30 = vpop.f32.mrf.mxu1 }
 0x1c5   :  { %3516 = vst [vmem:[#allocation18_spill] sm:$0xff] %v3425_v17 }
 0x1c6   :  { %v3427_v32 = vpop.f32.mrf.mxu0  ;;  %v3429_v23 = vpop.f32.mrf.mxu1 }
 0x1c7   :  { %3517 = vst [vmem:[#allocation19_spill] sm:$0xff] %v3427_v32 }
 0x1c8   :  { %v3431_v40 = vpop.f32.mrf.mxu0  ;;  %v3433_v2 = vpop.f32.mrf.mxu1 }
 0x1c9   :  { %3518 = vst [vmem:[#allocation20_spill] sm:$0xff] %v3431_v40  ;;  %3519 = vst [vmem:[#allocation21_spill] sm:$0xff] %v3433_v2  ;;  %v2019_v40 = vadd.f32 %v2018_v0, %v1900_v9 }
 0x1ca   :  { %v3435_v12 = vpop.f32.mrf.mxu0  ;;  %v3437_v33 = vpop.f32.mrf.mxu1 }
 0x1cb   :  { %3520 = vst [vmem:[#allocation22_spill] sm:$0xff] %v3435_v12  ;;  %3521 = vst [vmem:[#allocation23_spill] sm:$0xff] %v3437_v33  ;;  %v2143_v33 = vadd.f32 %v2142_v20, %v2019_v40  ;;  %v1926_v20 = vadd.f32 %v3405_v49, %v3391_v5  ;;  %v1933_v40 = vadd.f32 %v3411_v54, %v3395_v13 }
 0x1cc   :  { %v3439_v27 = vpop.f32.mrf.mxu1  ;;  %v2272_v55 = vpop.f32.mrf.mxu0 }
 0x1cd   :  { %3522 = vst [vmem:[#allocation24_spill] sm:$0xff] %v3439_v27  ;;  %v2273_v2 = vadd.f32 %v2272_v55, %v2141_v60  ;;  %v1907_v27 = vadd.f32 %v1906_v47, %v3379_v36  ;;  %v1919_v55 = vadd.f32 %v3397_v43, %v3387_v45  ;;  %v2035_v36 = vadd.f32 %v2034_v63, %v1914_v26  ;;  %v3525_v26 = vld [vmem:[#allocation5_spill] sm:$0xff] }
 0x1ce   :  { %v3441_v15 = vpop.f32.mrf.mxu1  ;;  %v2274_v34 = vpop.f32.mrf.mxu0 }
 0x1cf   :  { %3523 = vst [vmem:[#allocation25_spill] sm:$0xff] %v3441_v15  ;;  %v1912_v15 = vadd.f32 %v1911_v19, %v3383_v6  ;;  %v2275_v14 = vadd.f32 %v2274_v34, %v2143_v33  ;;  %v2027_v39 = vadd.f32 %v2026_v4, %v1907_v27  ;;  %v2464_v27 = vpop.permute.xlu1 %2463  ;;  %v2041_v61 = vadd.f32 %v2040_v1, %v1919_v55 }
 0x1d0   :  { %v3443_v32 = vpop.f32.mrf.mxu1  ;;  %v2279_v44 = vpop.f32.mrf.mxu0 }
 0x1d1   :  { %v2033_v9 = vadd.f32 %v2032_v21, %v1912_v15  ;;  %v2280_v29 = vadd.f32 %v2279_v44, %v2150_v10  ;;  %v2152_v47 = vadd.f32 %v2151_v11, %v2027_v39  ;;  %v1921_v15 = vadd.f32 %v3401_v57, %v3389_v38 }
 0x1d2   :  { %v3445_v17 = vpop.f32.mrf.mxu1  ;;  %v2281_v12 = vpop.f32.mrf.mxu0  ;;  %v2161_v44 = vadd.f32 %v2160_v31, %v2035_v36  ;;  %v2168_v18 = vadd.f32 %v2167_v30, %v2041_v61 }
 0x1d3   :  { %v2159_v34 = vadd.f32 %v2158_v25, %v2033_v9  ;;  %v2469_v10 = vpop.permute.xlu1 %2468  ;;  %v3526_v9 = vld [vmem:[#allocation18_spill] sm:$0xff] }
 0x1d4   :  { %v2286_v37 = vpop.f32.mrf.mxu0  ;;  %v2388_v41 = vpop.f32.mrf.mxu1 }
 0x1d5   :  { %v2389_v58 = vadd.f32 %v2388_v41, %v2273_v2  ;;  %v2287_v21 = vadd.f32 %v2286_v37, %v2159_v34  ;;  %v2049_v2 = vadd.f32 %v3421_v16, %v1926_v20  ;;  %v3529_v34 = vld [vmem:[#allocation14_spill] sm:$0xff]  ;;  %v3534_v20 = vld [vmem:[#allocation17_spill] sm:$0xff] }
 0x1d6   :  { %v2288_v56 = vpop.f32.mrf.mxu0  ;;  %v2390_v0 = vpop.f32.mrf.mxu1 }
 0x1d7   :  { %v2435_v24 = vadd.f32 %v2389_v58, %v3353_v51  ;;  %v2391_v60 = vadd.f32 %v2390_v0, %v2275_v14  ;;  %v2282_v51 = vadd.f32 %v2281_v12, %v2152_v47  ;;  %v2289_v57 = vadd.f32 %v2288_v56, %v2161_v44 }
 0x1d8   :  { %v2293_v6 = vpop.f32.mrf.mxu0  ;;  %v2395_v8 = vpop.f32.mrf.mxu1  ;;  %v1935_v14 = vadd.f32 %v3413_v52, %v3399_v50 }
 0x1d9   :  { %v2436_v33 = vadd.f32 %v2391_v60, %v3355_v46  ;;  %v2491_v19 = vadd.f32 %v2459_v7, %v2435_v24  ;;  %v2396_v22 = vadd.f32 %v2395_v8, %v2280_v29  ;;  %v1928_v46 = vadd.f32 %v3409_v62, %v3393_v42  ;;  %v3527_v24 = vld [vmem:[#allocation23_spill] sm:$0xff] }
 0x1da   :  { %v2295_v48 = vpop.f32.mrf.mxu0  ;;  %v2397_v4 = vpop.f32.mrf.mxu1  ;;  %v2294_v62 = vadd.f32 %v2293_v6, %v2168_v18  ;;  %v2057_v29 = vadd.f32 %v3526_v9, %v1933_v40  ;;  %v3528_v6 = vld [vmem:[#allocation6_spill] sm:$0xff]  ;;  %v3535_v18 = vld [vmem:[#allocation20_spill] sm:$0xff] }
 0x1db   :  { %v2492_v45 = vadd.f32 %v2459_v7, %v2436_v33  ;;  %v2505_v43 = vmax.f32 %v2491_v19, 0.0  ;;  %v2437_v63 = vadd.f32 %v2396_v22, %v3357_v59  ;;  %v2398_v11 = vadd.f32 %v2397_v4, %v2282_v51  ;;  %v3530_v33 = vld [vmem:[#allocation16_spill] sm:$0xff]  ;;  %v3531_v22 = vld [vmem:[#allocation19_spill] sm:$0xff]  ;;  %v3541_v9 = vld [vmem:[#allocation10_spill] sm:$0xff] }
 0x1dc   :  { %v2300_v25 = vpop.f32.mrf.mxu0  ;;  %v2402_v38 = vpop.f32.mrf.mxu1  ;;  %v2043_v59 = vadd.f32 %v3419_v28, %v1921_v15  ;;  %v2051_v13 = vadd.f32 %v3423_v35, %v1928_v46  ;;  %v1940_v19 = vadd.f32 %v3530_v33, %v3529_v34  ;;  %v3532_v15 = vld [vmem:[#allocation24_spill] sm:$0xff] }
 0x1dd   :  { %v2506_v1 = vmax.f32 %v2492_v45, 0.0  ;;  %2519 = vst [vmem:[#allocation2] sm:$0xff] %v2505_v43  ;;  %v2493_v12 = vadd.f32 %v2464_v27, %v2437_v63  ;;  %v2403_v31 = vadd.f32 %v2402_v38, %v2287_v21  ;;  %v2438_v5 = vadd.f32 %v2398_v11, %v3359_v53  ;;  %v3524_v53 = vld [vmem:[#allocation21_spill] sm:$0xff]  ;;  %v3533_v63 = vld [vmem:[#allocation15_spill] sm:$0xff] }
 0x1de   :  { %v2302_v49 = vpop.f32.mrf.mxu0  ;;  %v2404_v42 = vpop.f32.mrf.mxu1  ;;  %v2170_v54 = vadd.f32 %v3429_v23, %v2043_v59  ;;  %v2177_v7 = vadd.f32 %v3524_v53, %v2049_v2  ;;  %v2179_v60 = vadd.f32 %v3527_v24, %v2051_v13  ;;  %v2186_v61 = vadd.f32 %v3532_v15, %v2057_v29  ;;  %v3538_v59 = vld [vmem:[#allocation8_spill] sm:$0xff]  ;;  %v3540_v13 = vld [vmem:[#allocation9_spill] sm:$0xff] }
 0x1df   :  { %2520 = vst [vmem:[#allocation2 + $0x8] sm:$0xff] %v2506_v1  ;;  %v2507_v30 = vmax.f32 %v2493_v12, 0.0  ;;  %v2439_v37 = vadd.f32 %v2403_v31, %v3361_v3  ;;  %v2405_v41 = vadd.f32 %v2404_v42, %v2289_v57  ;;  %v2494_v28 = vadd.f32 %v2464_v27, %v2438_v5  ;;  %v2474_v3 = vpop.permute.xlu0 %2473  ;;  %v3537_v57 = vld [vmem:[#allocation7_spill] sm:$0xff] }
 0x1e0   :  { %v2307_v16 = vpop.f32.mrf.mxu0  ;;  %v2409_v58 = vpop.f32.mrf.mxu1  ;;  %v2296_v50 = vadd.f32 %v2295_v48, %v2170_v54  ;;  %v2301_v23 = vadd.f32 %v2300_v25, %v2177_v7  ;;  %v2059_v27 = vadd.f32 %v3531_v22, %v1935_v14  ;;  %v2303_v4 = vadd.f32 %v2302_v49, %v2179_v60  ;;  %v3536_v25 = vld [vmem:[#allocation25_spill] sm:$0xff]  ;;  %v3539_v49 = vld [vmem:[#allocation22_spill] sm:$0xff] }
 0x1e1   :  { %2521 = vst [vmem:[#allocation2 + $0x10] sm:$0xff] %v2507_v30  ;;  %v2440_v39 = vadd.f32 %v2405_v41, %v3525_v26  ;;  %v2495_v56 = vadd.f32 %v2469_v10, %v2439_v37  ;;  %v2410_v0 = vadd.f32 %v2409_v58, %v2294_v62  ;;  %v2508_v52 = vmax.f32 %v2494_v28, 0.0  ;;  %v2479_v37 = vpop.permute.xlu1 %2478 }
 0x1e2   :  { %v2309_v35 = vpop.f32.mrf.mxu0  ;;  %v2411_v55 = vpop.f32.mrf.mxu1  ;;  %v1942_v46 = vadd.f32 %v3534_v20, %v3533_v63  ;;  %v2065_v11 = vadd.f32 %v3535_v18, %v1940_v19  ;;  %v2188_v38 = vadd.f32 %v3536_v25, %v2059_v27  ;;  %v2308_v31 = vadd.f32 %v2307_v16, %v2186_v61  ;;  %v3544_v19 = vld [vmem:[#allocation13_spill] sm:$0xff] }
 0x1e3   :  { %v2496_v36 = vadd.f32 %v2469_v10, %v2440_v39  ;;  %v2509_v47 = vmax.f32 %v2495_v56, 0.0  ;;  %v2441_v8 = vadd.f32 %v2410_v0, %v3528_v6  ;;  %2522 = vst [vmem:[#allocation2 + $0x18] sm:$0xff] %v2508_v52  ;;  %v2412_v44 = vadd.f32 %v2411_v55, %v2296_v50  ;;  %v2484_v29 = vpop.permute.xlu0 %2483  ;;  %v3542_v50 = vld [vmem:[#allocation11_spill] sm:$0xff]  ;;  %v3543_v6 = vld [vmem:[#allocation12_spill] sm:$0xff] }
 0x1e4   :  { %v2416_v51 = vpop.f32.mrf.mxu1  ;;  %v2314_v45 = vpop.f32.mrf.mxu0  ;;  %v2067_v42 = vadd.f32 %v3539_v49, %v1942_v46  ;;  %v2195_v62 = vadd.f32 %v3443_v32, %v2065_v11  ;;  %v2310_v10 = vadd.f32 %v2309_v35, %v2188_v38 }
 0x1e5   :  { %v2510_v48 = vmax.f32 %v2496_v36, 0.0  ;;  %2523 = vst [vmem:[#allocation2 + $0x20] sm:$0xff] %v2509_v47  ;;  %v2497_v21 = vadd.f32 %v2474_v3, %v2441_v8  ;;  %v2417_v43 = vadd.f32 %v2416_v51, %v2301_v23  ;;  %v2442_v1 = vadd.f32 %v2412_v44, %v3537_v57  ;;  %v2489_v34 = vpop.permute.xlu1 %2488 }
 0x1e6   :  { %v2418_v12 = vpop.f32.mrf.mxu1  ;;  %v2316_v14 = vpop.f32.mrf.mxu0  ;;  %v2197_v16 = vadd.f32 %v3445_v17, %v2067_v42  ;;  %v2315_v7 = vadd.f32 %v2314_v45, %v2195_v62 }
 0x1e7   :  { %2524 = vst [vmem:[#allocation2 + $0x28] sm:$0xff] %v2510_v48  ;;  %v2511_v40 = vmax.f32 %v2497_v21, 0.0  ;;  %v2443_v2 = vadd.f32 %v2417_v43, %v3538_v59  ;;  %v2419_v5 = vadd.f32 %v2418_v12, %v2303_v4  ;;  %v2498_v30 = vadd.f32 %v2474_v3, %v2442_v1 }
 0x1e8   :  { %v2423_v41 = vpop.f32.mrf.mxu1  ;;  %v2317_v3 = vadd.f32 %v2316_v14, %v2197_v16 }
 0x1e9   :  { %2525 = vst [vmem:[#allocation2 + $0x30] sm:$0xff] %v2511_v40  ;;  %v2444_v54 = vadd.f32 %v2419_v5, %v3540_v13  ;;  %v2499_v28 = vadd.f32 %v2479_v37, %v2443_v2  ;;  %v2424_v58 = vadd.f32 %v2423_v41, %v2308_v31  ;;  %v2512_v53 = vmax.f32 %v2498_v30, 0.0 }
 0x1ea   :  { %v2425_v26 = vpop.f32.mrf.mxu1 }
 0x1eb   :  { %v2500_v39 = vadd.f32 %v2479_v37, %v2444_v54  ;;  %v2513_v56 = vmax.f32 %v2499_v28, 0.0  ;;  %v2426_v0 = vadd.f32 %v2425_v26, %v2310_v10  ;;  %v2445_v32 = vadd.f32 %v2424_v58, %v3541_v9  ;;  %2526 = vst [vmem:[#allocation2 + $0x38] sm:$0xff] %v2512_v53 }
 0x1ec   :  { %v2430_v24 = vpop.f32.mrf.mxu1 }
 0x1ed   :  { %v2514_v60 = vmax.f32 %v2500_v39, 0.0  ;;  %2527 = vst [vmem:[#allocation2 + $0x40] sm:$0xff] %v2513_v56  ;;  %v2446_v52 = vadd.f32 %v2426_v0, %v3542_v50  ;;  %v2501_v35 = vadd.f32 %v2484_v29, %v2445_v32  ;;  %v2431_v55 = vadd.f32 %v2430_v24, %v2315_v7 }
 0x1ee   :  { %v2432_v23 = vpop.f32.mrf.mxu1 }
 0x1ef   :  { %2528 = vst [vmem:[#allocation2 + $0x48] sm:$0xff] %v2514_v60  ;;  %v2502_v17 = vadd.f32 %v2484_v29, %v2446_v52  ;;  %v2515_v36 = vmax.f32 %v2501_v35, 0.0  ;;  %v2433_v47 = vadd.f32 %v2432_v23, %v2317_v3  ;;  %v2447_v8 = vadd.f32 %v2431_v55, %v3543_v6 }
 0x1f1   :  { %v2516_v33 = vmax.f32 %v2502_v17, 0.0  ;;  %2529 = vst [vmem:[#allocation2 + $0x50] sm:$0xff] %v2515_v36  ;;  %v2448_v22 = vadd.f32 %v2433_v47, %v3544_v19  ;;  %v2503_v27 = vadd.f32 %v2489_v34, %v2447_v8 }
 0x1f3   :  { %2530 = vst [vmem:[#allocation2 + $0x58] sm:$0xff] %v2516_v33  ;;  %v2504_v15 = vadd.f32 %v2489_v34, %v2448_v22  ;;  %v2517_v61 = vmax.f32 %v2503_v27, 0.0 }
 0x1f5   :  { %v2518_v44 = vmax.f32 %v2504_v15, 0.0  ;;  %2531 = vst [vmem:[#allocation2 + $0x60] sm:$0xff] %v2517_v61 }
 0x1f7   :  { %2532 = vst [vmem:[#allocation2 + $0x68] sm:$0xff] %v2518_v44 }
 0x1f8   :  { %2584 = shalt.err (!%p2581_p4)
}
 0x1f9   :  { %s2600_s17 = smov 256   ;;  %s2601_s18 = smov 16  }
 0x1fa   :  { %2544 = dma.vmem_to_hbm [thread:$0]  %s2539_s15, 1792, %s3500_s3, [#allocation3], %s2600_s17, %s2600_s17, %s2601_s18  }
 0x1fb   :  { %2593 = dma.done.wait [#allocation3], 1792  }
 0x1fc   :  { %2594 = vsyncadd [#allocation3], 4294965504 }
 0x1fd   :  { %2548 = vsyncpa [#allocation3], 1 }

</bundles_post_ra>
